<compile_context>
chip_gen: v6e
topology: v6e:2x2x1
jax: 0.10.0
libtpu: 0.0.40
codegen_flags: <defaults>
</compile_context>

<pallas_src>
import functools

import jax
import jax.numpy as jnp
from jax import lax
from jax.experimental import pallas as pl
from jax.experimental.pallas import tpu as pltpu

TM = 256  # row-tile for conv matmuls

# (cin, cout, stride(h,w), padding(h,w)) -- kernel is always 3x3
CONV_SPECS = [
    (3, 24, (2, 2), (0, 0)),
    (24, 36, (2, 2), (0, 0)),
    (36, 64, (2, 1), (1, 0)),
    (64, 64, (1, 1), (0, 0)),
]


def _round_up(x, m):
    return x + (-x % m)


# --------------------------------------------------------------------------
# Pallas kernels
# --------------------------------------------------------------------------
def _input_neuron_kernel(x_ref, o_ref, sums_ref, *, threshold):
    """Input block: ReLU + sigma-delta gate (no norm) + partial |y| sum."""
    y = jnp.maximum(x_ref[...], 0.0)
    y = jnp.where(y >= threshold, y, 0.0)        # y >= 0, abs is redundant
    o_ref[...] = y.astype(o_ref.dtype)
    sums_ref[...] = jnp.zeros((1, 8, 128), jnp.float32) + jnp.sum(y)


def _conv_block_kernel(a_ref, b_ref, mean_ref, o_ref, sums_ref, *,
                       threshold, m_true):
    """Fused conv-as-matmul + MeanOnlyBatchNorm + ReLU + gate + |y| partial sum."""
    tm = a_ref.shape[0]
    y = jnp.dot(a_ref[...], b_ref[...], preferred_element_type=jnp.float32)
    y = y - mean_ref[...]                        # norm: subtract per-channel mean
    y = jnp.maximum(y, 0.0)                      # ReLU
    y = jnp.where(y >= threshold, y, 0.0)        # sigma-delta gate (T=1)
    o_ref[...] = y.astype(o_ref.dtype)
    # mask out zero-padded M rows before the event-rate partial sum
    rid = pl.program_id(0) * tm + lax.broadcasted_iota(jnp.int32, (tm, 1), 0)
    s = jnp.sum(jnp.where(rid < m_true, y, 0.0))
    sums_ref[...] = jnp.zeros((1, 8, 128), jnp.float32) + s


def _dense_tail_kernel(x_ref, w1_ref, w2_ref, w3_ref, w4_ref, o_ref, sums_ref,
                       *, threshold, n_true):
    """Fused Dense(flat->100->50->10) + Output(10->1) with norm/ReLU/gate/loss."""
    mp = x_ref.shape[0]
    rmask = (lax.broadcasted_iota(jnp.int32, (mp, 1), 0) < n_true).astype(jnp.float32)
    inv_n = 1.0 / n_true

    def block(h_bf16, w_ref):
        y = jnp.dot(h_bf16, w_ref[...], preferred_element_type=jnp.float32)
        y = y - jnp.sum(y, axis=0, keepdims=True) * inv_n   # MeanOnlyBatchNorm
        y = jnp.maximum(y, 0.0)                             # ReLU
        y = jnp.where(y >= threshold, y, 0.0)               # sigma-delta gate
        y = y * rmask                                       # zero padded batch rows
        return y, jnp.sum(y)                                # y >= 0 -> sum == sum|y|

    y1, s1 = block(x_ref[...], w1_ref)
    y2, s2 = block(y1.astype(jnp.bfloat16), w2_ref)
    y3, s3 = block(y2.astype(jnp.bfloat16), w3_ref)

    # Output head: weight stored as (1, 10); x @ W.T as a lane reduction.
    # Norm only, no ReLU / gate.
    y4 = jnp.sum(y3 * w4_ref[...].astype(jnp.float32), axis=1, keepdims=True)
    y4 = y4 - jnp.sum(y4, axis=0, keepdims=True) * inv_n
    y4 = y4 * rmask
    s4 = jnp.sum(jnp.abs(y4))

    o_ref[...] = y4.astype(o_ref.dtype)
    row = lax.broadcasted_iota(jnp.int32, (8, 128), 0)
    sums_ref[...] = (jnp.where(row == 0, s1, 0.0) + jnp.where(row == 1, s2, 0.0)
                     + jnp.where(row == 2, s3, 0.0) + jnp.where(row == 3, s4, 0.0))


# --------------------------------------------------------------------------
# Kernel wrappers
# --------------------------------------------------------------------------
def input_neuron(x, threshold):
    """Elementwise ReLU + gate over any-shape tensor; returns (gated bf16, sum|y|)."""
    shape = x.shape
    L = x.size
    flat = x.reshape(-1).astype(jnp.float32)
    rows = _round_up(pl.cdiv(L, 128), 16)
    tr = min(512, rows)
    rows_p = _round_up(rows, tr)
    flat = jnp.pad(flat, (0, rows_p * 128 - L)).reshape(rows_p, 128)
    gi = rows_p // tr
    y, partial = pl.pallas_call(
        functools.partial(_input_neuron_kernel, threshold=threshold),
        out_shape=(jax.ShapeDtypeStruct((rows_p, 128), jnp.bfloat16),
                   jax.ShapeDtypeStruct((gi, 8, 128), jnp.float32)),
        grid=(gi,),
        in_specs=[pl.BlockSpec((tr, 128), lambda i: (i, 0))],
        out_specs=(pl.BlockSpec((tr, 128), lambda i: (i, 0)),
                   pl.BlockSpec((1, 8, 128), lambda i: (i, 0, 0))),
        compiler_params=pltpu.CompilerParams(dimension_semantics=("parallel",)),
    )(flat)
    gated = y.reshape(-1)[:L].reshape(shape)
    return gated, jnp.sum(partial[:, 0, 0])


def conv_block(patches, w_mat, threshold):
    """patches (M, K), w_mat (K, N) bf16 -> (gated y (M, N) bf16, sum|y|)."""
    M, K = patches.shape
    N = w_mat.shape[1]
    # MeanOnlyBatchNorm mean via linearity: col_mean(A@B) = row_mean(A) @ B.
    # Computed once in glue (tiny (1,K)@(K,N) matvec), subtracted in the epilogue.
    a_mean = jnp.mean(patches, axis=0, keepdims=True, dtype=jnp.float32)
    col_mean = jnp.dot(a_mean, w_mat.astype(jnp.float32))          # (1, N) f32

    a = patches.astype(jnp.bfloat16)
    tm = TM if M > TM else _round_up(M, 16)
    Mp = _round_up(M, tm)
    a = jnp.pad(a, ((0, Mp - M), (0, 0)))
    gi = Mp // tm

    y, partial = pl.pallas_call(
        functools.partial(_conv_block_kernel, threshold=threshold, m_true=M),
        out_shape=(jax.ShapeDtypeStruct((Mp, N), jnp.bfloat16),
                   jax.ShapeDtypeStruct((gi, 8, 128), jnp.float32)),
        grid=(gi,),
        in_specs=[pl.BlockSpec((tm, K), lambda i: (i, 0)),
                  pl.BlockSpec((K, N), lambda i: (0, 0)),
                  pl.BlockSpec((1, N), lambda i: (0, 0))],
        out_specs=(pl.BlockSpec((tm, N), lambda i: (i, 0)),
                   pl.BlockSpec((1, 8, 128), lambda i: (i, 0, 0))),
        compiler_params=pltpu.CompilerParams(dimension_semantics=("parallel",)),
    )(a, w_mat, col_mean)
    return y[:M], jnp.sum(partial[:, 0, 0])


def dense_tail(x, w1, w2, w3, w4_head, threshold):
    """Fused dense tail.  x (n, flat) bf16 -> ((n, 1) f32, (8, 128) stage |y| sums)."""
    n, flat = x.shape
    Mp = _round_up(n, 8)
    xp = jnp.pad(x, ((0, Mp - n), (0, 0)))
    y, sums = pl.pallas_call(
        functools.partial(_dense_tail_kernel, threshold=threshold, n_true=n),
        out_shape=(jax.ShapeDtypeStruct((Mp, 1), jnp.float32),
                   jax.ShapeDtypeStruct((8, 128), jnp.float32)),
        grid=(1,),
        in_specs=[pl.BlockSpec((Mp, flat), lambda i: (0, 0)),
                  pl.BlockSpec(w1.shape, lambda i: (0, 0)),
                  pl.BlockSpec(w2.shape, lambda i: (0, 0)),
                  pl.BlockSpec(w3.shape, lambda i: (0, 0)),
                  pl.BlockSpec(w4_head.shape, lambda i: (0, 0))],
        out_specs=(pl.BlockSpec((Mp, 1), lambda i: (0, 0)),
                   pl.BlockSpec((8, 128), lambda i: (0, 0))),
    )(xp, w1, w2, w3, w4_head)
    return y[:n], sums


# --------------------------------------------------------------------------
# Glue: im2col, weight-normalized parameter init (prepped once, bf16)
# --------------------------------------------------------------------------
def im2col(x, kh, kw, stride, padding):
    """x: (N, H, W, C) -> patches (N*Ho*Wo, kh*kw*C), column order (kh, kw, C)."""
    sh, sw = stride
    ph, pw = padding
    x = jnp.pad(x, ((0, 0), (ph, ph), (pw, pw), (0, 0)))
    n, hp, wp, c = x.shape
    ho = (hp - kh) // sh + 1
    wo = (wp - kw) // sw + 1
    cols = []
    for i in range(kh):
        for j in range(kw):
            cols.append(x[:, i:i + sh * (ho - 1) + 1:sh,
                          j:j + sw * (wo - 1) + 1:sw, :])
    p = jnp.stack(cols, axis=3)                       # (N, Ho, Wo, kh*kw, C)
    return p.reshape(n * ho * wo, kh * kw * c), ho, wo


def make_conv_weight(key, cout, cin, kh, kw, scale=2.0):
    v = jax.random.normal(key, (cout, cin, kh, kw), jnp.float32)
    norm = jnp.sqrt(jnp.sum(v * v, axis=(1, 2, 3), keepdims=True)) + 1e-12
    return scale * v / norm          # weight_norm=True, weight_scale=2 (at init)


def make_dense_weight(key, cout, cin, scale=2.0):
    v = jax.random.normal(key, (cout, cin), jnp.float32)
    norm = jnp.sqrt(jnp.sum(v * v, axis=1, keepdims=True)) + 1e-12
    return scale * v / norm


def init_params(key, in_hw):
    keys = jax.random.split(key, 8)
    conv_mats = []
    h, w = in_hw
    for idx, (cin, cout, stride, pad) in enumerate(CONV_SPECS):
        wc = make_conv_weight(keys[idx], cout, cin, 3, 3)
        # (cout,cin,3,3) -> (kh,kw,cin,cout) -> (9*cin, cout), bf16, matches im2col order
        conv_mats.append(jnp.transpose(wc, (2, 3, 1, 0))
                         .reshape(9 * cin, cout).astype(jnp.bfloat16))
        h = (h + 2 * pad[0] - 3) // stride[0] + 1
        w = (w + 2 * pad[1] - 3) // stride[1] + 1
    flat = 64 * h * w                 # analogue of 64 * 45 * 6 at full resolution
    dense_mats = []
    for idx, (din, dout) in enumerate([(flat, 100), (100, 50), (50, 10)]):
        wd = make_dense_weight(keys[4 + idx], dout, din)          # (dout, din)
        dense_mats.append(jnp.transpose(wd).astype(jnp.bfloat16))  # (din, dout)
    head_mat = make_dense_weight(keys[7], 1, 10).astype(jnp.bfloat16)  # (1, 10)
    return {"conv_mats": conv_mats, "dense_mats": dense_mats, "head_mat": head_mat}


# --------------------------------------------------------------------------
# Forward pass (mirrors PilotNetwork.forward)
# --------------------------------------------------------------------------
def _rate_term(total_abs, size):
    # event_rate_loss: mse(relu(mean|x| - 0.01), 0)
    return jnp.maximum(total_abs / size - 0.01, 0.0) ** 2


def pilot_forward(x_nchw, params, threshold=0.1):
    x = jnp.transpose(x_nchw, (0, 2, 3, 1)).astype(jnp.float32)   # NCHW -> NHWC
    n = x.shape[0]
    counts = []

    # --- Input block: sigma-delta input neuron (ReLU + delta gate, T=1)
    xact, s_in = input_neuron(x, threshold)
    event_cost = _rate_term(s_in, x.size)
    counts.append(0.0)   # torch.sum(|x[..., 1:]| > 0) == 0 since T == 1

    # --- Conv blocks: im2col glue + fused matmul/norm/ReLU/gate/loss kernel
    for (cin, cout, stride, pad), w_mat in zip(CONV_SPECS, params["conv_mats"]):
        patches, ho, wo = im2col(xact, 3, 3, stride, pad)
        y, s = conv_block(patches, w_mat, threshold)              # (N*Ho*Wo, cout) bf16
        xact = y.reshape(n, ho, wo, cout)
        event_cost = event_cost + _rate_term(s, y.size)
        counts.append(0.0)

    # --- Flatten block (torch flattens NCHW order)
    flat = jnp.transpose(xact, (0, 3, 1, 2)).reshape(n, -1)

    # --- Dense tail: 3 Dense blocks + Output head, fully fused in VMEM
    # (Dropout p=0.2 is an inference no-op.)
    y_out, dsums = dense_tail(flat, params["dense_mats"][0], params["dense_mats"][1],
                              params["dense_mats"][2], params["head_mat"], threshold)
    for k, width in enumerate([100, 50, 10, 1]):
        event_cost = event_cost + _rate_term(dsums[k, 0], n * width)
        counts.append(0.0)

    out = y_out[..., None]                                   # restore T=1: (N, 1, 1)
    count = jnp.asarray(counts, jnp.float32).reshape(1, -1)
    return out, event_cost, count


# --------------------------------------------------------------------------
if __name__ == "__main__":
    key = jax.random.PRNGKey(0)
    k_x, k_p = jax.random.split(key)

    # Small input consistent with the module's conv stack (NCHW, 3 channels).
    x = jax.random.normal(k_x, (2, 3, 33, 33), jnp.float32)
    params = init_params(k_p, in_hw=(33, 33))

    fwd = jax.jit(functools.partial(pilot_forward, threshold=0.1))
    out, event_cost, count = fwd(x, params)
    jax.block_until_ready((out, event_cost, count))

    assert out.shape == (2, 1, 1)
    assert count.shape == (1, 9)          # 9 neuron-bearing blocks
    assert event_cost.shape == ()
    print("KERNEL_OK")
</pallas_src>

<mosaic_0001>
module attributes {stable_mosaic.version = 11 : i64} {
  func.func @_input_neuron_kernel(%arg0: i32, %arg1: memref<64x128xf32, #tpu.memory_space<vmem>>, %arg2: memref<64x128xbf16, #tpu.memory_space<vmem>>, %arg3: memref<1x8x128xf32, #tpu.memory_space<vmem>>) attributes {dimension_semantics = [#tpu.dimension_semantics<parallel>], iteration_bounds = array<i64: 1>, scalar_prefetch = 0 : i64, scratch_operands = 0 : i64, tpu.core_type = #tpu.core_type<tc>, window_params = [{transform_indices = @transform_0, window_bounds = array<i64: 64, 128>}, {transform_indices = @transform_1, window_bounds = array<i64: 64, 128>}, {transform_indices = @transform_2, window_bounds = array<i64: 1, 8, 128>}]} {
    %c0 = arith.constant 0 : index
    %c0_0 = arith.constant 0 : index
    %0 = vector.load %arg1[%c0, %c0_0] : memref<64x128xf32, #tpu.memory_space<vmem>>, vector<64x128xf32>
    %cst = arith.constant 0.000000e+00 : f32
    %1 = vector.broadcast %cst : f32 to vector<64x128xf32>
    %2 = arith.maximumf %0, %1 : vector<64x128xf32>
    %cst_1 = arith.constant 1.000000e-01 : f32
    %3 = vector.broadcast %cst_1 : f32 to vector<64x128xf32>
    %4 = arith.cmpf oge, %2, %3 : vector<64x128xf32>
    %cst_2 = arith.constant 0.000000e+00 : f32
    %5 = vector.broadcast %cst_2 : f32 to vector<64x128xf32>
    %6 = arith.select %4, %2, %5 : vector<64x128xi1>, vector<64x128xf32>
    %7 = arith.truncf %6 : vector<64x128xf32> to vector<64x128xbf16>
    %c0_3 = arith.constant 0 : index
    %c0_4 = arith.constant 0 : index
    %8 = vector.load %arg2[%c0_3, %c0_4] : memref<64x128xbf16, #tpu.memory_space<vmem>>, vector<64x128xbf16>
    tpu.vector_store %arg2[%c0_3, %c0_4], %7 {strides = array<i32>} : memref<64x128xbf16, #tpu.memory_space<vmem>>, vector<64x128xbf16>,
    %cst_5 = arith.constant 0.000000e+00 : f32
    %9 = vector.broadcast %cst_5 : f32 to vector<1x8x128xf32>
    %10 = vector.shape_cast %6 : vector<64x128xf32> to vector<1x64x128xf32>
    %cst_6 = arith.constant dense<0.000000e+00> : vector<1xf32>
    %11 = vector.multi_reduction <add>, %10, %cst_6 [1, 2] : vector<1x64x128xf32> to vector<1xf32>
    %12 = vector.shape_cast %11 : vector<1xf32> to vector<1x1x1xf32>
    %13 = vector.extract %12[0, 0, 0] : f32 from vector<1x1x1xf32>
    %14 = vector.broadcast %13 : f32 to vector<1x8x128xf32>
    %15 = arith.addf %9, %14 : vector<1x8x128xf32>
    %c0_7 = arith.constant 0 : index
    %c0_8 = arith.constant 0 : index
    %c0_9 = arith.constant 0 : index
    %16 = vector.load %arg3[%c0_7, %c0_8, %c0_9] : memref<1x8x128xf32, #tpu.memory_space<vmem>>, vector<1x8x128xf32>
    tpu.vector_store %arg3[%c0_7, %c0_8, %c0_9], %15 {strides = array<i32>} : memref<1x8x128xf32, #tpu.memory_space<vmem>>, vector<1x8x128xf32>,
    return
  }
  func.func @transform_0(%arg0: i32) -> (i32, i32) {
    %c0_i32 = arith.constant 0 : i32
    %c0_i32_0 = arith.constant 0 : i32
    return %arg0, %c0_i32 : i32, i32
  }
  func.func @transform_1(%arg0: i32) -> (i32, i32) {
    %c0_i32 = arith.constant 0 : i32
    %c0_i32_0 = arith.constant 0 : i32
    return %arg0, %c0_i32 : i32, i32
  }
  func.func @transform_2(%arg0: i32) -> (i32, i32, i32) {
    %c0_i32 = arith.constant 0 : i32
    %c0_i32_0 = arith.constant 0 : i32
    %c0_i32_1 = arith.constant 0 : i32
    return %arg0, %c0_i32, %c0_i32_0 : i32, i32, i32
  }
}

module attributes {stable_mosaic.version = 11 : i64} {
  func.func @_conv_block_kernel(%arg0: i32, %arg1: memref<256x27xbf16, #tpu.memory_space<vmem>>, %arg2: memref<27x24xbf16, #tpu.memory_space<vmem>>, %arg3: memref<1x24xf32, #tpu.memory_space<vmem>>, %arg4: memref<256x24xbf16, #tpu.memory_space<vmem>>, %arg5: memref<1x8x128xf32, #tpu.memory_space<vmem>>) attributes {dimension_semantics = [#tpu.dimension_semantics<parallel>], iteration_bounds = array<i64: 2>, scalar_prefetch = 0 : i64, scratch_operands = 0 : i64, tpu.core_type = #tpu.core_type<tc>, window_params = [{transform_indices = @transform_0, window_bounds = array<i64: 256, 27>}, {pipeline_mode = #tpu.pipeline_mode<synchronous>, transform_indices = @transform_1, window_bounds = array<i64: 27, 24>}, {pipeline_mode = #tpu.pipeline_mode<synchronous>, transform_indices = @transform_2, window_bounds = array<i64: 1, 24>}, {transform_indices = @transform_3, window_bounds = array<i64: 256, 24>}, {transform_indices = @transform_4, window_bounds = array<i64: 1, 8, 128>}]} {
    %c0 = arith.constant 0 : index
    %c0_0 = arith.constant 0 : index
    %0 = vector.load %arg1[%c0, %c0_0] : memref<256x27xbf16, #tpu.memory_space<vmem>>, vector<256x27xbf16>
    %c0_1 = arith.constant 0 : index
    %c0_2 = arith.constant 0 : index
    %1 = vector.load %arg2[%c0_1, %c0_2] : memref<27x24xbf16, #tpu.memory_space<vmem>>, vector<27x24xbf16>
    %cst = arith.constant dense<0.000000e+00> : vector<256x24xf32>
    %2 = tpu.matmul %0, %1, %cst {dimension_numbers = #tpu.dot_dimension_numbers<[1], [0], [0], [1], [0, 0, 1, 1], [], []>} : vector<256x27xbf16>, vector<27x24xbf16>, vector<256x24xf32> -> vector<256x24xf32>
    %c0_3 = arith.constant 0 : index
    %c0_4 = arith.constant 0 : index
    %3 = vector.load %arg3[%c0_3, %c0_4] : memref<1x24xf32, #tpu.memory_space<vmem>>, vector<1x24xf32>
    %4 = vector.broadcast %3 : vector<1x24xf32> to vector<256x24xf32>
    %5 = arith.subf %2, %4 : vector<256x24xf32>
    %cst_5 = arith.constant 0.000000e+00 : f32
    %6 = vector.broadcast %cst_5 : f32 to vector<256x24xf32>
    %7 = arith.maximumf %5, %6 : vector<256x24xf32>
    %cst_6 = arith.constant 1.000000e-01 : f32
    %8 = vector.broadcast %cst_6 : f32 to vector<256x24xf32>
    %9 = arith.cmpf oge, %7, %8 : vector<256x24xf32>
    %cst_7 = arith.constant 0.000000e+00 : f32
    %10 = vector.broadcast %cst_7 : f32 to vector<256x24xf32>
    %11 = arith.select %9, %7, %10 : vector<256x24xi1>, vector<256x24xf32>
    %12 = arith.truncf %11 : vector<256x24xf32> to vector<256x24xbf16>
    %c0_8 = arith.constant 0 : index
    %c0_9 = arith.constant 0 : index
    %13 = vector.load %arg4[%c0_8, %c0_9] : memref<256x24xbf16, #tpu.memory_space<vmem>>, vector<256x24xbf16>
    tpu.vector_store %arg4[%c0_8, %c0_9], %12 {strides = array<i32>} : memref<256x24xbf16, #tpu.memory_space<vmem>>, vector<256x24xbf16>,
    %c256_i32 = arith.constant 256 : i32
    %14 = arith.muli %arg0, %c256_i32 : i32
    %15 = tpu.iota {dimensions = array<i32: 0>} : vector<256x1xi32>
    %16 = vector.broadcast %14 : i32 to vector<256x1xi32>
    %17 = arith.addi %16, %15 : vector<256x1xi32>
    %c512_i32 = arith.constant 512 : i32
    %18 = vector.broadcast %c512_i32 : i32 to vector<256x1xi32>
    %19 = arith.cmpi slt, %17, %18 : vector<256x1xi32>
    %cst_10 = arith.constant 0.000000e+00 : f32
    %20 = vector.shape_cast %19 : vector<256x1xi1> to vector<256x1xi1>
    %21 = vector.broadcast %20 : vector<256x1xi1> to vector<256x24xi1>
    %22 = vector.broadcast %cst_10 : f32 to vector<256x24xf32>
    %23 = arith.select %21, %11, %22 : vector<256x24xi1>, vector<256x24xf32>
    %24 = vector.shape_cast %23 : vector<256x24xf32> to vector<1x256x24xf32>
    %cst_11 = arith.constant dense<0.000000e+00> : vector<1xf32>
    %25 = vector.multi_reduction <add>, %24, %cst_11 [1, 2] : vector<1x256x24xf32> to vector<1xf32>
    %26 = vector.shape_cast %25 : vector<1xf32> to vector<1x1x1xf32>
    %27 = vector.extract %26[0, 0, 0] : f32 from vector<1x1x1xf32>
    %cst_12 = arith.constant 0.000000e+00 : f32
    %28 = vector.broadcast %cst_12 : f32 to vector<1x8x128xf32>
    %29 = vector.broadcast %27 : f32 to vector<1x8x128xf32>
    %30 = arith.addf %28, %29 : vector<1x8x128xf32>
    %c0_13 = arith.constant 0 : index
    %c0_14 = arith.constant 0 : index
    %c0_15 = arith.constant 0 : index
    %31 = vector.load %arg5[%c0_13, %c0_14, %c0_15] : memref<1x8x128xf32, #tpu.memory_space<vmem>>, vector<1x8x128xf32>
    tpu.vector_store %arg5[%c0_13, %c0_14, %c0_15], %30 {strides = array<i32>} : memref<1x8x128xf32, #tpu.memory_space<vmem>>, vector<1x8x128xf32>,
    return
  }
  func.func @transform_0(%arg0: i32) -> (i32, i32) {
    %c0_i32 = arith.constant 0 : i32
    %c0_i32_0 = arith.constant 0 : i32
    return %arg0, %c0_i32 : i32, i32
  }
  func.func @transform_1(%arg0: i32) -> (i32, i32) {
    %c0_i32 = arith.constant 0 : i32
    %c0_i32_0 = arith.constant 0 : i32
    %c0_i32_1 = arith.constant 0 : i32
    return %c0_i32, %c0_i32_0 : i32, i32
  }
  func.func @transform_2(%arg0: i32) -> (i32, i32) {
    %c0_i32 = arith.constant 0 : i32
    %c0_i32_0 = arith.constant 0 : i32
    %c0_i32_1 = arith.constant 0 : i32
    return %c0_i32, %c0_i32_0 : i32, i32
  }
  func.func @transform_3(%arg0: i32) -> (i32, i32) {
    %c0_i32 = arith.constant 0 : i32
    %c0_i32_0 = arith.constant 0 : i32
    return %arg0, %c0_i32 : i32, i32
  }
  func.func @transform_4(%arg0: i32) -> (i32, i32, i32) {
    %c0_i32 = arith.constant 0 : i32
    %c0_i32_0 = arith.constant 0 : i32
    %c0_i32_1 = arith.constant 0 : i32
    return %arg0, %c0_i32, %c0_i32_0 : i32, i32, i32
  }
}

module attributes {stable_mosaic.version = 11 : i64} {
  func.func @_conv_block_kernel(%arg0: i32, %arg1: memref<112x216xbf16, #tpu.memory_space<vmem>>, %arg2: memref<216x36xbf16, #tpu.memory_space<vmem>>, %arg3: memref<1x36xf32, #tpu.memory_space<vmem>>, %arg4: memref<112x36xbf16, #tpu.memory_space<vmem>>, %arg5: memref<1x8x128xf32, #tpu.memory_space<vmem>>) attributes {dimension_semantics = [#tpu.dimension_semantics<parallel>], iteration_bounds = array<i64: 1>, scalar_prefetch = 0 : i64, scratch_operands = 0 : i64, tpu.core_type = #tpu.core_type<tc>, window_params = [{transform_indices = @transform_0, window_bounds = array<i64: 112, 216>}, {pipeline_mode = #tpu.pipeline_mode<synchronous>, transform_indices = @transform_1, window_bounds = array<i64: 216, 36>}, {pipeline_mode = #tpu.pipeline_mode<synchronous>, transform_indices = @transform_2, window_bounds = array<i64: 1, 36>}, {transform_indices = @transform_3, window_bounds = array<i64: 112, 36>}, {transform_indices = @transform_4, window_bounds = array<i64: 1, 8, 128>}]} {
    %c0 = arith.constant 0 : index
    %c0_0 = arith.constant 0 : index
    %0 = vector.load %arg1[%c0, %c0_0] : memref<112x216xbf16, #tpu.memory_space<vmem>>, vector<112x216xbf16>
    %c0_1 = arith.constant 0 : index
    %c0_2 = arith.constant 0 : index
    %1 = vector.load %arg2[%c0_1, %c0_2] : memref<216x36xbf16, #tpu.memory_space<vmem>>, vector<216x36xbf16>
    %cst = arith.constant dense<0.000000e+00> : vector<112x36xf32>
    %2 = tpu.matmul %0, %1, %cst {dimension_numbers = #tpu.dot_dimension_numbers<[1], [0], [0], [1], [0, 0, 1, 1], [], []>} : vector<112x216xbf16>, vector<216x36xbf16>, vector<112x36xf32> -> vector<112x36xf32>
    %c0_3 = arith.constant 0 : index
    %c0_4 = arith.constant 0 : index
    %3 = vector.load %arg3[%c0_3, %c0_4] : memref<1x36xf32, #tpu.memory_space<vmem>>, vector<1x36xf32>
    %4 = vector.broadcast %3 : vector<1x36xf32> to vector<112x36xf32>
    %5 = arith.subf %2, %4 : vector<112x36xf32>
    %cst_5 = arith.constant 0.000000e+00 : f32
    %6 = vector.broadcast %cst_5 : f32 to vector<112x36xf32>
    %7 = arith.maximumf %5, %6 : vector<112x36xf32>
    %cst_6 = arith.constant 1.000000e-01 : f32
    %8 = vector.broadcast %cst_6 : f32 to vector<112x36xf32>
    %9 = arith.cmpf oge, %7, %8 : vector<112x36xf32>
    %cst_7 = arith.constant 0.000000e+00 : f32
    %10 = vector.broadcast %cst_7 : f32 to vector<112x36xf32>
    %11 = arith.select %9, %7, %10 : vector<112x36xi1>, vector<112x36xf32>
    %12 = arith.truncf %11 : vector<112x36xf32> to vector<112x36xbf16>
    %c0_8 = arith.constant 0 : index
    %c0_9 = arith.constant 0 : index
    %13 = vector.load %arg4[%c0_8, %c0_9] : memref<112x36xbf16, #tpu.memory_space<vmem>>, vector<112x36xbf16>
    tpu.vector_store %arg4[%c0_8, %c0_9], %12 {strides = array<i32>} : memref<112x36xbf16, #tpu.memory_space<vmem>>, vector<112x36xbf16>,
    %c112_i32 = arith.constant 112 : i32
    %14 = arith.muli %arg0, %c112_i32 : i32
    %15 = tpu.iota {dimensions = array<i32: 0>} : vector<112x1xi32>
    %16 = vector.broadcast %14 : i32 to vector<112x1xi32>
    %17 = arith.addi %16, %15 : vector<112x1xi32>
    %c98_i32 = arith.constant 98 : i32
    %18 = vector.broadcast %c98_i32 : i32 to vector<112x1xi32>
    %19 = arith.cmpi slt, %17, %18 : vector<112x1xi32>
    %cst_10 = arith.constant 0.000000e+00 : f32
    %20 = vector.shape_cast %19 : vector<112x1xi1> to vector<112x1xi1>
    %21 = vector.broadcast %20 : vector<112x1xi1> to vector<112x36xi1>
    %22 = vector.broadcast %cst_10 : f32 to vector<112x36xf32>
    %23 = arith.select %21, %11, %22 : vector<112x36xi1>, vector<112x36xf32>
    %24 = vector.shape_cast %23 : vector<112x36xf32> to vector<1x112x36xf32>
    %cst_11 = arith.constant dense<0.000000e+00> : vector<1xf32>
    %25 = vector.multi_reduction <add>, %24, %cst_11 [1, 2] : vector<1x112x36xf32> to vector<1xf32>
    %26 = vector.shape_cast %25 : vector<1xf32> to vector<1x1x1xf32>
    %27 = vector.extract %26[0, 0, 0] : f32 from vector<1x1x1xf32>
    %cst_12 = arith.constant 0.000000e+00 : f32
    %28 = vector.broadcast %cst_12 : f32 to vector<1x8x128xf32>
    %29 = vector.broadcast %27 : f32 to vector<1x8x128xf32>
    %30 = arith.addf %28, %29 : vector<1x8x128xf32>
    %c0_13 = arith.constant 0 : index
    %c0_14 = arith.constant 0 : index
    %c0_15 = arith.constant 0 : index
    %31 = vector.load %arg5[%c0_13, %c0_14, %c0_15] : memref<1x8x128xf32, #tpu.memory_space<vmem>>, vector<1x8x128xf32>
    tpu.vector_store %arg5[%c0_13, %c0_14, %c0_15], %30 {strides = array<i32>} : memref<1x8x128xf32, #tpu.memory_space<vmem>>, vector<1x8x128xf32>,
    return
  }
  func.func @transform_0(%arg0: i32) -> (i32, i32) {
    %c0_i32 = arith.constant 0 : i32
    %c0_i32_0 = arith.constant 0 : i32
    return %arg0, %c0_i32 : i32, i32
  }
  func.func @transform_1(%arg0: i32) -> (i32, i32) {
    %c0_i32 = arith.constant 0 : i32
    %c0_i32_0 = arith.constant 0 : i32
    %c0_i32_1 = arith.constant 0 : i32
    return %c0_i32, %c0_i32_0 : i32, i32
  }
  func.func @transform_2(%arg0: i32) -> (i32, i32) {
    %c0_i32 = arith.constant 0 : i32
    %c0_i32_0 = arith.constant 0 : i32
    %c0_i32_1 = arith.constant 0 : i32
    return %c0_i32, %c0_i32_0 : i32, i32
  }
  func.func @transform_3(%arg0: i32) -> (i32, i32) {
    %c0_i32 = arith.constant 0 : i32
    %c0_i32_0 = arith.constant 0 : i32
    return %arg0, %c0_i32 : i32, i32
  }
  func.func @transform_4(%arg0: i32) -> (i32, i32, i32) {
    %c0_i32 = arith.constant 0 : i32
    %c0_i32_0 = arith.constant 0 : i32
    %c0_i32_1 = arith.constant 0 : i32
    return %arg0, %c0_i32, %c0_i32_0 : i32, i32, i32
  }
}

module attributes {stable_mosaic.version = 11 : i64} {
  func.func @_conv_block_kernel(%arg0: i32, %arg1: memref<48x324xbf16, #tpu.memory_space<vmem>>, %arg2: memref<324x64xbf16, #tpu.memory_space<vmem>>, %arg3: memref<1x64xf32, #tpu.memory_space<vmem>>, %arg4: memref<48x64xbf16, #tpu.memory_space<vmem>>, %arg5: memref<1x8x128xf32, #tpu.memory_space<vmem>>) attributes {dimension_semantics = [#tpu.dimension_semantics<parallel>], iteration_bounds = array<i64: 1>, scalar_prefetch = 0 : i64, scratch_operands = 0 : i64, tpu.core_type = #tpu.core_type<tc>, window_params = [{transform_indices = @transform_0, window_bounds = array<i64: 48, 324>}, {pipeline_mode = #tpu.pipeline_mode<synchronous>, transform_indices = @transform_1, window_bounds = array<i64: 324, 64>}, {pipeline_mode = #tpu.pipeline_mode<synchronous>, transform_indices = @transform_2, window_bounds = array<i64: 1, 64>}, {transform_indices = @transform_3, window_bounds = array<i64: 48, 64>}, {transform_indices = @transform_4, window_bounds = array<i64: 1, 8, 128>}]} {
    %c0 = arith.constant 0 : index
    %c0_0 = arith.constant 0 : index
    %0 = vector.load %arg1[%c0, %c0_0] : memref<48x324xbf16, #tpu.memory_space<vmem>>, vector<48x324xbf16>
    %c0_1 = arith.constant 0 : index
    %c0_2 = arith.constant 0 : index
    %1 = vector.load %arg2[%c0_1, %c0_2] : memref<324x64xbf16, #tpu.memory_space<vmem>>, vector<324x64xbf16>
    %cst = arith.constant dense<0.000000e+00> : vector<48x64xf32>
    %2 = tpu.matmul %0, %1, %cst {dimension_numbers = #tpu.dot_dimension_numbers<[1], [0], [0], [1], [0, 0, 1, 1], [], []>} : vector<48x324xbf16>, vector<324x64xbf16>, vector<48x64xf32> -> vector<48x64xf32>
    %c0_3 = arith.constant 0 : index
    %c0_4 = arith.constant 0 : index
    %3 = vector.load %arg3[%c0_3, %c0_4] : memref<1x64xf32, #tpu.memory_space<vmem>>, vector<1x64xf32>
    %4 = vector.broadcast %3 : vector<1x64xf32> to vector<48x64xf32>
    %5 = arith.subf %2, %4 : vector<48x64xf32>
    %cst_5 = arith.constant 0.000000e+00 : f32
    %6 = vector.broadcast %cst_5 : f32 to vector<48x64xf32>
    %7 = arith.maximumf %5, %6 : vector<48x64xf32>
    %cst_6 = arith.constant 1.000000e-01 : f32
    %8 = vector.broadcast %cst_6 : f32 to vector<48x64xf32>
    %9 = arith.cmpf oge, %7, %8 : vector<48x64xf32>
    %cst_7 = arith.constant 0.000000e+00 : f32
    %10 = vector.broadcast %cst_7 : f32 to vector<48x64xf32>
    %11 = arith.select %9, %7, %10 : vector<48x64xi1>, vector<48x64xf32>
    %12 = arith.truncf %11 : vector<48x64xf32> to vector<48x64xbf16>
    %c0_8 = arith.constant 0 : index
    %c0_9 = arith.constant 0 : index
    %13 = vector.load %arg4[%c0_8, %c0_9] : memref<48x64xbf16, #tpu.memory_space<vmem>>, vector<48x64xbf16>
    tpu.vector_store %arg4[%c0_8, %c0_9], %12 {strides = array<i32>} : memref<48x64xbf16, #tpu.memory_space<vmem>>, vector<48x64xbf16>,
    %c48_i32 = arith.constant 48 : i32
    %14 = arith.muli %arg0, %c48_i32 : i32
    %15 = tpu.iota {dimensions = array<i32: 0>} : vector<48x1xi32>
    %16 = vector.broadcast %14 : i32 to vector<48x1xi32>
    %17 = arith.addi %16, %15 : vector<48x1xi32>
    %c40_i32 = arith.constant 40 : i32
    %18 = vector.broadcast %c40_i32 : i32 to vector<48x1xi32>
    %19 = arith.cmpi slt, %17, %18 : vector<48x1xi32>
    %cst_10 = arith.constant 0.000000e+00 : f32
    %20 = vector.shape_cast %19 : vector<48x1xi1> to vector<48x1xi1>
    %21 = vector.broadcast %20 : vector<48x1xi1> to vector<48x64xi1>
    %22 = vector.broadcast %cst_10 : f32 to vector<48x64xf32>
    %23 = arith.select %21, %11, %22 : vector<48x64xi1>, vector<48x64xf32>
    %24 = vector.shape_cast %23 : vector<48x64xf32> to vector<1x48x64xf32>
    %cst_11 = arith.constant dense<0.000000e+00> : vector<1xf32>
    %25 = vector.multi_reduction <add>, %24, %cst_11 [1, 2] : vector<1x48x64xf32> to vector<1xf32>
    %26 = vector.shape_cast %25 : vector<1xf32> to vector<1x1x1xf32>
    %27 = vector.extract %26[0, 0, 0] : f32 from vector<1x1x1xf32>
    %cst_12 = arith.constant 0.000000e+00 : f32
    %28 = vector.broadcast %cst_12 : f32 to vector<1x8x128xf32>
    %29 = vector.broadcast %27 : f32 to vector<1x8x128xf32>
    %30 = arith.addf %28, %29 : vector<1x8x128xf32>
    %c0_13 = arith.constant 0 : index
    %c0_14 = arith.constant 0 : index
    %c0_15 = arith.constant 0 : index
    %31 = vector.load %arg5[%c0_13, %c0_14, %c0_15] : memref<1x8x128xf32, #tpu.memory_space<vmem>>, vector<1x8x128xf32>
    tpu.vector_store %arg5[%c0_13, %c0_14, %c0_15], %30 {strides = array<i32>} : memref<1x8x128xf32, #tpu.memory_space<vmem>>, vector<1x8x128xf32>,
    return
  }
  func.func @transform_0(%arg0: i32) -> (i32, i32) {
    %c0_i32 = arith.constant 0 : i32
    %c0_i32_0 = arith.constant 0 : i32
    return %arg0, %c0_i32 : i32, i32
  }
  func.func @transform_1(%arg0: i32) -> (i32, i32) {
    %c0_i32 = arith.constant 0 : i32
    %c0_i32_0 = arith.constant 0 : i32
    %c0_i32_1 = arith.constant 0 : i32
    return %c0_i32, %c0_i32_0 : i32, i32
  }
  func.func @transform_2(%arg0: i32) -> (i32, i32) {
    %c0_i32 = arith.constant 0 : i32
    %c0_i32_0 = arith.constant 0 : i32
    %c0_i32_1 = arith.constant 0 : i32
    return %c0_i32, %c0_i32_0 : i32, i32
  }
  func.func @transform_3(%arg0: i32) -> (i32, i32) {
    %c0_i32 = arith.constant 0 : i32
    %c0_i32_0 = arith.constant 0 : i32
    return %arg0, %c0_i32 : i32, i32
  }
  func.func @transform_4(%arg0: i32) -> (i32, i32, i32) {
    %c0_i32 = arith.constant 0 : i32
    %c0_i32_0 = arith.constant 0 : i32
    %c0_i32_1 = arith.constant 0 : i32
    return %arg0, %c0_i32, %c0_i32_0 : i32, i32, i32
  }
}

module attributes {stable_mosaic.version = 11 : i64} {
  func.func @_conv_block_kernel(%arg0: i32, %arg1: memref<16x576xbf16, #tpu.memory_space<vmem>>, %arg2: memref<576x64xbf16, #tpu.memory_space<vmem>>, %arg3: memref<1x64xf32, #tpu.memory_space<vmem>>, %arg4: memref<16x64xbf16, #tpu.memory_space<vmem>>, %arg5: memref<1x8x128xf32, #tpu.memory_space<vmem>>) attributes {dimension_semantics = [#tpu.dimension_semantics<parallel>], iteration_bounds = array<i64: 1>, scalar_prefetch = 0 : i64, scratch_operands = 0 : i64, tpu.core_type = #tpu.core_type<tc>, window_params = [{transform_indices = @transform_0, window_bounds = array<i64: 16, 576>}, {pipeline_mode = #tpu.pipeline_mode<synchronous>, transform_indices = @transform_1, window_bounds = array<i64: 576, 64>}, {pipeline_mode = #tpu.pipeline_mode<synchronous>, transform_indices = @transform_2, window_bounds = array<i64: 1, 64>}, {transform_indices = @transform_3, window_bounds = array<i64: 16, 64>}, {transform_indices = @transform_4, window_bounds = array<i64: 1, 8, 128>}]} {
    %c0 = arith.constant 0 : index
    %c0_0 = arith.constant 0 : index
    %0 = vector.load %arg1[%c0, %c0_0] : memref<16x576xbf16, #tpu.memory_space<vmem>>, vector<16x576xbf16>
    %c0_1 = arith.constant 0 : index
    %c0_2 = arith.constant 0 : index
    %1 = vector.load %arg2[%c0_1, %c0_2] : memref<576x64xbf16, #tpu.memory_space<vmem>>, vector<576x64xbf16>
    %cst = arith.constant dense<0.000000e+00> : vector<16x64xf32>
    %2 = tpu.matmul %0, %1, %cst {dimension_numbers = #tpu.dot_dimension_numbers<[1], [0], [0], [1], [0, 0, 1, 1], [], []>} : vector<16x576xbf16>, vector<576x64xbf16>, vector<16x64xf32> -> vector<16x64xf32>
    %c0_3 = arith.constant 0 : index
    %c0_4 = arith.constant 0 : index
    %3 = vector.load %arg3[%c0_3, %c0_4] : memref<1x64xf32, #tpu.memory_space<vmem>>, vector<1x64xf32>
    %4 = vector.broadcast %3 : vector<1x64xf32> to vector<16x64xf32>
    %5 = arith.subf %2, %4 : vector<16x64xf32>
    %cst_5 = arith.constant 0.000000e+00 : f32
    %6 = vector.broadcast %cst_5 : f32 to vector<16x64xf32>
    %7 = arith.maximumf %5, %6 : vector<16x64xf32>
    %cst_6 = arith.constant 1.000000e-01 : f32
    %8 = vector.broadcast %cst_6 : f32 to vector<16x64xf32>
    %9 = arith.cmpf oge, %7, %8 : vector<16x64xf32>
    %cst_7 = arith.constant 0.000000e+00 : f32
    %10 = vector.broadcast %cst_7 : f32 to vector<16x64xf32>
    %11 = arith.select %9, %7, %10 : vector<16x64xi1>, vector<16x64xf32>
    %12 = arith.truncf %11 : vector<16x64xf32> to vector<16x64xbf16>
    %c0_8 = arith.constant 0 : index
    %c0_9 = arith.constant 0 : index
    %13 = vector.load %arg4[%c0_8, %c0_9] : memref<16x64xbf16, #tpu.memory_space<vmem>>, vector<16x64xbf16>
    tpu.vector_store %arg4[%c0_8, %c0_9], %12 {strides = array<i32>} : memref<16x64xbf16, #tpu.memory_space<vmem>>, vector<16x64xbf16>,
    %c16_i32 = arith.constant 16 : i32
    %14 = arith.muli %arg0, %c16_i32 : i32
    %15 = tpu.iota {dimensions = array<i32: 0>} : vector<16x1xi32>
    %16 = vector.broadcast %14 : i32 to vector<16x1xi32>
    %17 = arith.addi %16, %15 : vector<16x1xi32>
    %c12_i32 = arith.constant 12 : i32
    %18 = vector.broadcast %c12_i32 : i32 to vector<16x1xi32>
    %19 = arith.cmpi slt, %17, %18 : vector<16x1xi32>
    %cst_10 = arith.constant 0.000000e+00 : f32
    %20 = vector.shape_cast %19 : vector<16x1xi1> to vector<16x1xi1>
    %21 = vector.broadcast %20 : vector<16x1xi1> to vector<16x64xi1>
    %22 = vector.broadcast %cst_10 : f32 to vector<16x64xf32>
    %23 = arith.select %21, %11, %22 : vector<16x64xi1>, vector<16x64xf32>
    %24 = vector.shape_cast %23 : vector<16x64xf32> to vector<1x16x64xf32>
    %cst_11 = arith.constant dense<0.000000e+00> : vector<1xf32>
    %25 = vector.multi_reduction <add>, %24, %cst_11 [1, 2] : vector<1x16x64xf32> to vector<1xf32>
    %26 = vector.shape_cast %25 : vector<1xf32> to vector<1x1x1xf32>
    %27 = vector.extract %26[0, 0, 0] : f32 from vector<1x1x1xf32>
    %cst_12 = arith.constant 0.000000e+00 : f32
    %28 = vector.broadcast %cst_12 : f32 to vector<1x8x128xf32>
    %29 = vector.broadcast %27 : f32 to vector<1x8x128xf32>
    %30 = arith.addf %28, %29 : vector<1x8x128xf32>
    %c0_13 = arith.constant 0 : index
    %c0_14 = arith.constant 0 : index
    %c0_15 = arith.constant 0 : index
    %31 = vector.load %arg5[%c0_13, %c0_14, %c0_15] : memref<1x8x128xf32, #tpu.memory_space<vmem>>, vector<1x8x128xf32>
    tpu.vector_store %arg5[%c0_13, %c0_14, %c0_15], %30 {strides = array<i32>} : memref<1x8x128xf32, #tpu.memory_space<vmem>>, vector<1x8x128xf32>,
    return
  }
  func.func @transform_0(%arg0: i32) -> (i32, i32) {
    %c0_i32 = arith.constant 0 : i32
    %c0_i32_0 = arith.constant 0 : i32
    return %arg0, %c0_i32 : i32, i32
  }
  func.func @transform_1(%arg0: i32) -> (i32, i32) {
    %c0_i32 = arith.constant 0 : i32
    %c0_i32_0 = arith.constant 0 : i32
    %c0_i32_1 = arith.constant 0 : i32
    return %c0_i32, %c0_i32_0 : i32, i32
  }
  func.func @transform_2(%arg0: i32) -> (i32, i32) {
    %c0_i32 = arith.constant 0 : i32
    %c0_i32_0 = arith.constant 0 : i32
    %c0_i32_1 = arith.constant 0 : i32
    return %c0_i32, %c0_i32_0 : i32, i32
  }
  func.func @transform_3(%arg0: i32) -> (i32, i32) {
    %c0_i32 = arith.constant 0 : i32
    %c0_i32_0 = arith.constant 0 : i32
    return %arg0, %c0_i32 : i32, i32
  }
  func.func @transform_4(%arg0: i32) -> (i32, i32, i32) {
    %c0_i32 = arith.constant 0 : i32
    %c0_i32_0 = arith.constant 0 : i32
    %c0_i32_1 = arith.constant 0 : i32
    return %arg0, %c0_i32, %c0_i32_0 : i32, i32, i32
  }
}

module attributes {stable_mosaic.version = 11 : i64} {
  func.func @_dense_tail_kernel(%arg0: i32, %arg1: memref<8x384xbf16, #tpu.memory_space<vmem>>, %arg2: memref<384x100xbf16, #tpu.memory_space<vmem>>, %arg3: memref<100x50xbf16, #tpu.memory_space<vmem>>, %arg4: memref<50x10xbf16, #tpu.memory_space<vmem>>, %arg5: memref<1x10xbf16, #tpu.memory_space<vmem>>, %arg6: memref<8x1xf32, #tpu.memory_space<vmem>>, %arg7: memref<8x128xf32, #tpu.memory_space<vmem>>) attributes {dimension_semantics = [#tpu.dimension_semantics<arbitrary>], iteration_bounds = array<i64: 1>, scalar_prefetch = 0 : i64, scratch_operands = 0 : i64, tpu.core_type = #tpu.core_type<tc>, window_params = [{pipeline_mode = #tpu.pipeline_mode<synchronous>, transform_indices = @transform_0, window_bounds = array<i64: 8, 384>}, {pipeline_mode = #tpu.pipeline_mode<synchronous>, transform_indices = @transform_1, window_bounds = array<i64: 384, 100>}, {pipeline_mode = #tpu.pipeline_mode<synchronous>, transform_indices = @transform_2, window_bounds = array<i64: 100, 50>}, {pipeline_mode = #tpu.pipeline_mode<synchronous>, transform_indices = @transform_3, window_bounds = array<i64: 50, 10>}, {pipeline_mode = #tpu.pipeline_mode<synchronous>, transform_indices = @transform_4, window_bounds = array<i64: 1, 10>}, {pipeline_mode = #tpu.pipeline_mode<synchronous>, transform_indices = @transform_5, window_bounds = array<i64: 8, 1>}, {pipeline_mode = #tpu.pipeline_mode<synchronous>, transform_indices = @transform_6, window_bounds = array<i64: 8, 128>}]} {
    %0 = tpu.iota {dimensions = array<i32: 0>} : vector<8x1xi32>
    %c2_i32 = arith.constant 2 : i32
    %1 = vector.broadcast %c2_i32 : i32 to vector<8x1xi32>
    %2 = arith.cmpi slt, %0, %1 : vector<8x1xi32>
    %3 = arith.extui %2 : vector<8x1xi1> to vector<8x1xi32>
    %4 = arith.sitofp %3 : vector<8x1xi32> to vector<8x1xf32>
    %c0 = arith.constant 0 : index
    %c0_0 = arith.constant 0 : index
    %5 = vector.load %arg1[%c0, %c0_0] : memref<8x384xbf16, #tpu.memory_space<vmem>>, vector<8x384xbf16>
    %c0_1 = arith.constant 0 : index
    %c0_2 = arith.constant 0 : index
    %6 = vector.load %arg2[%c0_1, %c0_2] : memref<384x100xbf16, #tpu.memory_space<vmem>>, vector<384x100xbf16>
    %cst = arith.constant dense<0.000000e+00> : vector<8x100xf32>
    %7 = tpu.matmul %5, %6, %cst {dimension_numbers = #tpu.dot_dimension_numbers<[1], [0], [0], [1], [0, 0, 1, 1], [], []>} : vector<8x384xbf16>, vector<384x100xbf16>, vector<8x100xf32> -> vector<8x100xf32>
    %cst_3 = arith.constant dense<0.000000e+00> : vector<100xf32>
    %8 = vector.multi_reduction <add>, %7, %cst_3 [0] : vector<8x100xf32> to vector<100xf32>
    %9 = vector.shape_cast %8 : vector<100xf32> to vector<1x100xf32>
    %cst_4 = arith.constant 5.000000e-01 : f32
    %10 = vector.broadcast %cst_4 : f32 to vector<1x100xf32>
    %11 = arith.mulf %9, %10 : vector<1x100xf32>
    %12 = vector.broadcast %11 : vector<1x100xf32> to vector<8x100xf32>
    %13 = arith.subf %7, %12 : vector<8x100xf32>
    %cst_5 = arith.constant 0.000000e+00 : f32
    %14 = vector.broadcast %cst_5 : f32 to vector<8x100xf32>
    %15 = arith.maximumf %13, %14 : vector<8x100xf32>
    %cst_6 = arith.constant 1.000000e-01 : f32
    %16 = vector.broadcast %cst_6 : f32 to vector<8x100xf32>
    %17 = arith.cmpf oge, %15, %16 : vector<8x100xf32>
    %cst_7 = arith.constant 0.000000e+00 : f32
    %18 = vector.broadcast %cst_7 : f32 to vector<8x100xf32>
    %19 = arith.select %17, %15, %18 : vector<8x100xi1>, vector<8x100xf32>
    %20 = vector.broadcast %4 : vector<8x1xf32> to vector<8x100xf32>
    %21 = arith.mulf %19, %20 : vector<8x100xf32>
    %22 = vector.shape_cast %21 : vector<8x100xf32> to vector<1x8x100xf32>
    %cst_8 = arith.constant dense<0.000000e+00> : vector<1xf32>
    %23 = vector.multi_reduction <add>, %22, %cst_8 [1, 2] : vector<1x8x100xf32> to vector<1xf32>
    %24 = vector.shape_cast %23 : vector<1xf32> to vector<1x1x1xf32>
    %25 = vector.extract %24[0, 0, 0] : f32 from vector<1x1x1xf32>
    %26 = arith.truncf %21 : vector<8x100xf32> to vector<8x100xbf16>
    %c0_9 = arith.constant 0 : index
    %c0_10 = arith.constant 0 : index
    %27 = vector.load %arg3[%c0_9, %c0_10] : memref<100x50xbf16, #tpu.memory_space<vmem>>, vector<100x50xbf16>
    %cst_11 = arith.constant dense<0.000000e+00> : vector<8x50xf32>
    %28 = tpu.matmul %26, %27, %cst_11 {dimension_numbers = #tpu.dot_dimension_numbers<[1], [0], [0], [1], [0, 0, 1, 1], [], []>} : vector<8x100xbf16>, vector<100x50xbf16>, vector<8x50xf32> -> vector<8x50xf32>
    %cst_12 = arith.constant dense<0.000000e+00> : vector<50xf32>
    %29 = vector.multi_reduction <add>, %28, %cst_12 [0] : vector<8x50xf32> to vector<50xf32>
    %30 = vector.shape_cast %29 : vector<50xf32> to vector<1x50xf32>
    %cst_13 = arith.constant 5.000000e-01 : f32
    %31 = vector.broadcast %cst_13 : f32 to vector<1x50xf32>
    %32 = arith.mulf %30, %31 : vector<1x50xf32>
    %33 = vector.broadcast %32 : vector<1x50xf32> to vector<8x50xf32>
    %34 = arith.subf %28, %33 : vector<8x50xf32>
    %cst_14 = arith.constant 0.000000e+00 : f32
    %35 = vector.broadcast %cst_14 : f32 to vector<8x50xf32>
    %36 = arith.maximumf %34, %35 : vector<8x50xf32>
    %cst_15 = arith.constant 1.000000e-01 : f32
    %37 = vector.broadcast %cst_15 : f32 to vector<8x50xf32>
    %38 = arith.cmpf oge, %36, %37 : vector<8x50xf32>
    %cst_16 = arith.constant 0.000000e+00 : f32
    %39 = vector.broadcast %cst_16 : f32 to vector<8x50xf32>
    %40 = arith.select %38, %36, %39 : vector<8x50xi1>, vector<8x50xf32>
    %41 = vector.broadcast %4 : vector<8x1xf32> to vector<8x50xf32>
    %42 = arith.mulf %40, %41 : vector<8x50xf32>
    %43 = vector.shape_cast %42 : vector<8x50xf32> to vector<1x8x50xf32>
    %cst_17 = arith.constant dense<0.000000e+00> : vector<1xf32>
    %44 = vector.multi_reduction <add>, %43, %cst_17 [1, 2] : vector<1x8x50xf32> to vector<1xf32>
    %45 = vector.shape_cast %44 : vector<1xf32> to vector<1x1x1xf32>
    %46 = vector.extract %45[0, 0, 0] : f32 from vector<1x1x1xf32>
    %47 = arith.truncf %42 : vector<8x50xf32> to vector<8x50xbf16>
    %c0_18 = arith.constant 0 : index
    %c0_19 = arith.constant 0 : index
    %48 = vector.load %arg4[%c0_18, %c0_19] : memref<50x10xbf16, #tpu.memory_space<vmem>>, vector<50x10xbf16>
    %cst_20 = arith.constant dense<0.000000e+00> : vector<8x10xf32>
    %49 = tpu.matmul %47, %48, %cst_20 {dimension_numbers = #tpu.dot_dimension_numbers<[1], [0], [0], [1], [0, 0, 1, 1], [], []>} : vector<8x50xbf16>, vector<50x10xbf16>, vector<8x10xf32> -> vector<8x10xf32>
    %cst_21 = arith.constant dense<0.000000e+00> : vector<10xf32>
    %50 = vector.multi_reduction <add>, %49, %cst_21 [0] : vector<8x10xf32> to vector<10xf32>
    %51 = vector.shape_cast %50 : vector<10xf32> to vector<1x10xf32>
    %cst_22 = arith.constant 5.000000e-01 : f32
    %52 = vector.broadcast %cst_22 : f32 to vector<1x10xf32>
    %53 = arith.mulf %51, %52 : vector<1x10xf32>
    %54 = vector.broadcast %53 : vector<1x10xf32> to vector<8x10xf32>
    %55 = arith.subf %49, %54 : vector<8x10xf32>
    %cst_23 = arith.constant 0.000000e+00 : f32
    %56 = vector.broadcast %cst_23 : f32 to vector<8x10xf32>
    %57 = arith.maximumf %55, %56 : vector<8x10xf32>
    %cst_24 = arith.constant 1.000000e-01 : f32
    %58 = vector.broadcast %cst_24 : f32 to vector<8x10xf32>
    %59 = arith.cmpf oge, %57, %58 : vector<8x10xf32>
    %cst_25 = arith.constant 0.000000e+00 : f32
    %60 = vector.broadcast %cst_25 : f32 to vector<8x10xf32>
    %61 = arith.select %59, %57, %60 : vector<8x10xi1>, vector<8x10xf32>
    %62 = vector.broadcast %4 : vector<8x1xf32> to vector<8x10xf32>
    %63 = arith.mulf %61, %62 : vector<8x10xf32>
    %64 = vector.shape_cast %63 : vector<8x10xf32> to vector<1x8x10xf32>
    %cst_26 = arith.constant dense<0.000000e+00> : vector<1xf32>
    %65 = vector.multi_reduction <add>, %64, %cst_26 [1, 2] : vector<1x8x10xf32> to vector<1xf32>
    %66 = vector.shape_cast %65 : vector<1xf32> to vector<1x1x1xf32>
    %67 = vector.extract %66[0, 0, 0] : f32 from vector<1x1x1xf32>
    %c0_27 = arith.constant 0 : index
    %c0_28 = arith.constant 0 : index
    %68 = vector.load %arg5[%c0_27, %c0_28] : memref<1x10xbf16, #tpu.memory_space<vmem>>, vector<1x10xbf16>
    %69 = arith.extf %68 : vector<1x10xbf16> to vector<1x10xf32>
    %70 = vector.broadcast %69 : vector<1x10xf32> to vector<8x10xf32>
    %71 = arith.mulf %63, %70 : vector<8x10xf32>
    %cst_29 = arith.constant dense<0.000000e+00> : vector<8xf32>
    %72 = vector.multi_reduction <add>, %71, %cst_29 [1] : vector<8x10xf32> to vector<8xf32>
    %73 = vector.shape_cast %72 : vector<8xf32> to vector<8x1xf32>
    %cst_30 = arith.constant dense<0.000000e+00> : vector<1xf32>
    %74 = vector.multi_reduction <add>, %73, %cst_30 [0] : vector<8x1xf32> to vector<1xf32>
    %75 = vector.shape_cast %74 : vector<1xf32> to vector<1x1xf32>
    %cst_31 = arith.constant 5.000000e-01 : f32
    %76 = vector.broadcast %cst_31 : f32 to vector<1x1xf32>
    %77 = arith.mulf %75, %76 : vector<1x1xf32>
    %78 = vector.broadcast %77 : vector<1x1xf32> to vector<8x1xf32>
    %79 = arith.subf %73, %78 : vector<8x1xf32>
    %80 = arith.mulf %79, %4 : vector<8x1xf32>
    %81 = math.absf %80 : vector<8x1xf32>
    %82 = vector.shape_cast %81 : vector<8x1xf32> to vector<1x8x1xf32>
    %cst_32 = arith.constant dense<0.000000e+00> : vector<1xf32>
    %83 = vector.multi_reduction <add>, %82, %cst_32 [1, 2] : vector<1x8x1xf32> to vector<1xf32>
    %84 = vector.shape_cast %83 : vector<1xf32> to vector<1x1x1xf32>
    %85 = vector.extract %84[0, 0, 0] : f32 from vector<1x1x1xf32>
    %c0_33 = arith.constant 0 : index
    %c0_34 = arith.constant 0 : index
    %86 = vector.load %arg6[%c0_33, %c0_34] : memref<8x1xf32, #tpu.memory_space<vmem>>, vector<8x1xf32>
    tpu.vector_store %arg6[%c0_33, %c0_34], %80 {strides = array<i32>} : memref<8x1xf32, #tpu.memory_space<vmem>>, vector<8x1xf32>,
    %87 = tpu.iota {dimensions = array<i32: 0>} : vector<8x128xi32>
    %c0_i32 = arith.constant 0 : i32
    %88 = vector.broadcast %c0_i32 : i32 to vector<8x128xi32>
    %89 = arith.cmpi eq, %87, %88 : vector<8x128xi32>
    %cst_35 = arith.constant 0.000000e+00 : f32
    %90 = vector.broadcast %25 : f32 to vector<8x128xf32>
    %91 = vector.broadcast %cst_35 : f32 to vector<8x128xf32>
    %92 = arith.select %89, %90, %91 : vector<8x128xi1>, vector<8x128xf32>
    %c1_i32 = arith.constant 1 : i32
    %93 = vector.broadcast %c1_i32 : i32 to vector<8x128xi32>
    %94 = arith.cmpi eq, %87, %93 : vector<8x128xi32>
    %cst_36 = arith.constant 0.000000e+00 : f32
    %95 = vector.broadcast %46 : f32 to vector<8x128xf32>
    %96 = vector.broadcast %cst_36 : f32 to vector<8x128xf32>
    %97 = arith.select %94, %95, %96 : vector<8x128xi1>, vector<8x128xf32>
    %98 = arith.addf %92, %97 : vector<8x128xf32>
    %c2_i32_37 = arith.constant 2 : i32
    %99 = vector.broadcast %c2_i32_37 : i32 to vector<8x128xi32>
    %100 = arith.cmpi eq, %87, %99 : vector<8x128xi32>
    %cst_38 = arith.constant 0.000000e+00 : f32
    %101 = vector.broadcast %67 : f32 to vector<8x128xf32>
    %102 = vector.broadcast %cst_38 : f32 to vector<8x128xf32>
    %103 = arith.select %100, %101, %102 : vector<8x128xi1>, vector<8x128xf32>
    %104 = arith.addf %98, %103 : vector<8x128xf32>
    %c3_i32 = arith.constant 3 : i32
    %105 = vector.broadcast %c3_i32 : i32 to vector<8x128xi32>
    %106 = arith.cmpi eq, %87, %105 : vector<8x128xi32>
    %cst_39 = arith.constant 0.000000e+00 : f32
    %107 = vector.broadcast %85 : f32 to vector<8x128xf32>
    %108 = vector.broadcast %cst_39 : f32 to vector<8x128xf32>
    %109 = arith.select %106, %107, %108 : vector<8x128xi1>, vector<8x128xf32>
    %110 = arith.addf %104, %109 : vector<8x128xf32>
    %c0_40 = arith.constant 0 : index
    %c0_41 = arith.constant 0 : index
    %111 = vector.load %arg7[%c0_40, %c0_41] : memref<8x128xf32, #tpu.memory_space<vmem>>, vector<8x128xf32>
    tpu.vector_store %arg7[%c0_40, %c0_41], %110 {strides = array<i32>} : memref<8x128xf32, #tpu.memory_space<vmem>>, vector<8x128xf32>,
    return
  }
  func.func @transform_0(%arg0: i32) -> (i32, i32) {
    %c0_i32 = arith.constant 0 : i32
    %c0_i32_0 = arith.constant 0 : i32
    %c0_i32_1 = arith.constant 0 : i32
    return %c0_i32, %c0_i32_0 : i32, i32
  }
  func.func @transform_1(%arg0: i32) -> (i32, i32) {
    %c0_i32 = arith.constant 0 : i32
    %c0_i32_0 = arith.constant 0 : i32
    %c0_i32_1 = arith.constant 0 : i32
    return %c0_i32, %c0_i32_0 : i32, i32
  }
  func.func @transform_2(%arg0: i32) -> (i32, i32) {
    %c0_i32 = arith.constant 0 : i32
    %c0_i32_0 = arith.constant 0 : i32
    %c0_i32_1 = arith.constant 0 : i32
    return %c0_i32, %c0_i32_0 : i32, i32
  }
  func.func @transform_3(%arg0: i32) -> (i32, i32) {
    %c0_i32 = arith.constant 0 : i32
    %c0_i32_0 = arith.constant 0 : i32
    %c0_i32_1 = arith.constant 0 : i32
    return %c0_i32, %c0_i32_0 : i32, i32
  }
  func.func @transform_4(%arg0: i32) -> (i32, i32) {
    %c0_i32 = arith.constant 0 : i32
    %c0_i32_0 = arith.constant 0 : i32
    %c0_i32_1 = arith.constant 0 : i32
    return %c0_i32, %c0_i32_0 : i32, i32
  }
  func.func @transform_5(%arg0: i32) -> (i32, i32) {
    %c0_i32 = arith.constant 0 : i32
    %c0_i32_0 = arith.constant 0 : i32
    %c0_i32_1 = arith.constant 0 : i32
    return %c0_i32, %c0_i32_0 : i32, i32
  }
  func.func @transform_6(%arg0: i32) -> (i32, i32) {
    %c0_i32 = arith.constant 0 : i32
    %c0_i32_0 = arith.constant 0 : i32
    %c0_i32_1 = arith.constant 0 : i32
    return %c0_i32, %c0_i32_0 : i32, i32
  }
}

</mosaic_0001>

<bundles_post_ra>
// kernel: pilot_forward.6
= control target key start
LH: loop header
LB: loop body
LE: loop exit
PB: predicated region body
PF: predicated region fallthrough
CT: control target
= control target key end

     0   :  { %s204_s0 = inlined_call_operand.vmem [shape: f32[64,128], index: 0, kind: input, shape index: {}]   ;;  %s205_s1 = inlined_call_operand.vmem [shape: bf16[64,128], index: 1, kind: output, shape index: {0}]   ;;  %s206_s2 = inlined_call_operand.vmem [shape: f32[1,8,128], index: 2, kind: output, shape index: {1}]  }
   0x1   :  { %v10_v0 = vld [vmem:[%s204_s0] sm:$0xff]  ;;  %v11_v1 = vld [vmem:[%s204_s0 + $0x8] sm:$0xff]  ;;  %v12_v2 = vld [vmem:[%s204_s0 + $0x10] sm:$0xff] }
   0x2   :  { %v13_v3 = vld [vmem:[%s204_s0 + $0x18] sm:$0xff]  ;;  %v14_v4 = vld [vmem:[%s204_s0 + $0x20] sm:$0xff]  ;;  %v15_v5 = vld [vmem:[%s204_s0 + $0x28] sm:$0xff]  ;;  %v18_v6 = vmax.f32 %v10_v0, 0.0  ;;  %v19_v7 = vmax.f32 %v11_v1, 0.0  ;;  %v20_v8 = vmax.f32 %v12_v2, 0.0 }
   0x3   :  { %v16_v9 = vld [vmem:[%s204_s0 + $0x30] sm:$0xff]  ;;  %v17_v10 = vld [vmem:[%s204_s0 + $0x38] sm:$0xff]  ;;  %v21_v11 = vmax.f32 %v13_v3, 0.0  ;;  %v22_v12 = vmax.f32 %v14_v4, 0.0  ;;  %v23_v13 = vmax.f32 %v15_v5, 0.0 }
   0x4   :  { %v24_v14 = vmax.f32 %v16_v9, 0.0  ;;  %v25_v15 = vmax.f32 %v17_v10, 0.0  ;;  %vm26_vm0 = vcmp.ge.f32.partialorder %v18_v6, 0.1  ;;  %vm27_vm1 = vcmp.ge.f32.partialorder %v19_v7, 0.1 }
   0x5   :  { %vm28_vm2 = vcmp.ge.f32.partialorder %v20_v8, 0.1  ;;  %vm29_vm3 = vcmp.ge.f32.partialorder %v21_v11, 0.1  ;;  %vm30_vm4 = vcmp.ge.f32.partialorder %v22_v12, 0.1 }
   0x6   :  { %vm31_vm5 = vcmp.ge.f32.partialorder %v23_v13, 0.1  ;;  %vm32_vm6 = vcmp.ge.f32.partialorder %v24_v14, 0.1  ;;  %vm33_vm7 = vcmp.ge.f32.partialorder %v25_v15, 0.1 }
   0x7   :  { %v34_v16 = vsel %vm26_vm0, %v18_v6, 0.0  ;;  %v35_v17 = vsel %vm27_vm1, %v19_v7, 0.0  ;;  %v36_v18 = vsel %vm28_vm2, %v20_v8, 0.0  ;;  %v37_v19 = vsel %vm29_vm3, %v21_v11, 0.0 }
   0x8   :  { %v38_v20 = vsel %vm30_vm4, %v22_v12, 0.0  ;;  %v39_v21 = vsel %vm31_vm5, %v23_v13, 0.0  ;;  %v40_v22 = vsel %vm32_vm6, %v24_v14, 0.0  ;;  %v41_v23 = vsel %vm33_vm7, %v25_v15, 0.0 }
   0x9   :  { %v128_v24 = vpack.c.bf16 %v35_v17, %v34_v16  ;;  %v133_v25 = vpack.c.bf16 %v37_v19, %v36_v18  ;;  %v138_v26 = vpack.c.bf16 %v39_v21, %v38_v20  ;;  %v143_v27 = vpack.c.bf16 %v41_v23, %v40_v22 }
   0xa   :  { %v82_v28 = vadd.f32 %v35_v17, %v34_v16 }
   0xb   :  { %129 = vst [vmem:[%s205_s1] sm:$0xff] %v128_v24   ;;  %145 = vst [vmem:[%s205_s1 + $0x8] sm:$0xff] %v133_v25  }
   0xc   :  { %146 = vst [vmem:[%s205_s1 + $0x10] sm:$0xff] %v138_v26   ;;  %147 = vst [vmem:[%s205_s1 + $0x18] sm:$0xff] %v143_v27   ;;  %v83_v29 = vadd.f32 %v82_v28, %v36_v18 }
   0xe   :  { %v84_v30 = vadd.f32 %v83_v29, %v37_v19 }
  0x10   :  { %v85_v31 = vadd.f32 %v84_v30, %v38_v20 }
  0x12   :  { %v86_v32 = vadd.f32 %v85_v31, %v39_v21 }
  0x14   :  { %v87_v33 = vadd.f32 %v86_v32, %v40_v22 }
  0x16   :  { %v88_v34 = vadd.f32 %v87_v33, %v41_v23 }
  0x18   :  { %89 = vadd.xlane.f32.xlu0 %v88_v34 }
  0xa1   :  { %v90_v35 = vpop.xlane.xlu0 %89 }
  0xa2   :  { %v91_v36 = vrot.slane %v90_v35, 4 }
  0xa4   :  { %v92_v37 = vadd.f32 %v91_v36, %v90_v35 }
  0xa6   :  { %v93_v38 = vrot.slane %v92_v37, 2 }
  0xa8   :  { %v94_v39 = vadd.f32 %v93_v38, %v92_v37 }
  0xaa   :  { %v95_v40 = vrot.slane %v94_v39, 1 }
  0xac   :  { %v96_v41 = vadd.f32 %v95_v40, %v94_v39 }
  0xae   :  { %148 = vpush %v96_v41 }
  0xdf   :  { %s149_s4 = spop %148 }
  0xe0   :  { %v98_v42 = vstv %s149_s4 }
  0xe1   :  { %100 = vst [vmem:[%s206_s2] sm:$0xff] %v98_v42 }

// kernel: pilot_forward.7
= control target key start
LH: loop header
LB: loop body
LE: loop exit
PB: predicated region body
PF: predicated region fallthrough
CT: control target
= control target key end

     0   :  { %s1444_s15 = smov 0   ;;  %s1919_s0 = inlined_call_operand.vmem [shape: bf16[512,27], index: 0, kind: input, shape index: {}]   ;;  %s1920_s1 = inlined_call_operand.vmem [shape: bf16[27,24], index: 1, kind: input, shape index: {}]   ;;  %s1921_s2 = inlined_call_operand.vmem [shape: f32[1,24], index: 2, kind: input, shape index: {}]   ;;  %s1922_s3 = inlined_call_operand.vmem [shape: bf16[512,24], index: 3, kind: output, shape index: {0}]   ;;  %s1923_s4 = inlined_call_operand.vmem [shape: f32[2,8,128], index: 4, kind: output, shape index: {1}]  }
   0x1 LB: > { %s1450_s16 = sadd.s32 4294967295, %s1416_s15   ;;  %p1215_p0 = scmp.ge.s32.totalorder %s1416_s15, 1  ;;  %s1416_s15 = sphi %s1444_s15, %s15_s15  }
   0x2   : > { %p166_p1 = scmp.lt.s32.totalorder %s1416_s15, 3 }
   0x4   : > { %p167_p2 = pnand %p1215_p0, %p166_p1 }
   0x5   : > { %s1216_s19 = sshll.u32 (!%p167_p2), %s1450_s16, 5  ;;  %s1288_s26 = sshll.u32 (!%p167_p2), %s1450_s16, 8 }
   0x6   : > { %170 = sbr.rel (%p167_p2) target bundleno = 503 (0x1f7), region = 32  ;;  %p197_p3 = scmp.lt.s32.totalorder (!%p167_p2), %s1216_s19, 63 }
   0x7   : > { %p208_p4 = scmp.lt.s32.totalorder (!%p167_p2), %s1450_s16, 1 }
   0xb   : > { %v1392_v0 = vld [vmem:[%s1920_s1 + $0x8] sm:$0x3f]   ;;  %vm389_vm0 = vcmask 1044480   ;;  %vm390_vm1 = vcmask 1045504   ;;  %v1418_v1 = vmov 65535   ;;  %v1393_v5 = vld [vmem:[%s1920_s1] sm:$0xff]   ;;  %v854_v22 = vlaneseq }
   0xc   : > { %v391_v2 = vsel %vm389_vm0, 4294967295, %v1418_v1  ;;  %s1925_s19 = smov (!%p197_p3, %s1216_s19), 63  ;;  %vm340_vm2 = vcmask 220160   ;;  %v1508_v26 = vstv %s1288_s26  ;;  %v1549_v46 = vld [vmem:[%s1921_s2] ss:$0 sm:$0xff]  ;;  %vm820_vm3 = vcmask 191488  }
   0xd   : > { %v392_v3 = vsel %vm390_vm1, %v391_v2, 0  ;;  %s1217_s22 = sshll.u32 %s1925_s19, 2  ;;  %v1503_v23 = vshrl.u32 %v854_v22, 7  ;;  %vm1048_vm6 = vcmask 195584   ;;  %s1927_s16 = smov (!%p208_p4, %s1450_s16), 1 }
   0xe   : > { %v394_v4 = vand.u32 %v1392_v0, %v392_v3  ;;  %s1469_s25 = scalar_lea.vmem %s1919_s0, %s1217_s22  ;;  %s1619_s5 = scalar_lea.vmem %s1922_s3, %s1217_s22 }
   0xf   : > { %v1394_v6 = vld [vmem:[%s1469_s25] sm:$0xff]   ;;  %v1395_v7 = vld [vmem:[%s1469_s25 + $0x8] sm:$0xff]   ;;  %v1396_v8 = vld [vmem:[%s1469_s25 + $0x10] sm:$0xff]   ;;  %v857_v24 = vadd.s32 16, %v1503_v23  ;;  %v858_v25 = vadd.s32 24, %v1503_v23  ;;  %v856_v27 = vadd.s32 8, %v1503_v23  ;;  %v1517_v32 = vadd.s32 %v1508_v26, %v1503_v23 }
  0x10   : > { %1341 = vmatprep.subr.bf16.mxu0 %v394_v4  ;;  %1377 = vmatprep.subr.bf16.mxu1 %v394_v4  ;;  %v1397_v9 = vld [vmem:[%s1469_s25 + $0x18] sm:$0xff]   ;;  %v1398_v10 = vld [vmem:[%s1469_s25 + $0x20] sm:$0xff]   ;;  %v1403_v12 = vld [vmem:[%s1469_s25 + $0x48] sm:$0xff]   ;;  %v861_v28 = vadd.s32 48, %v1503_v23  ;;  %v859_v29 = vadd.s32 32, %v1503_v23  ;;  %v862_v30 = vadd.s32 56, %v1503_v23 }
  0x11   : > { %1342 = vmatpush3.bf16.msra.mxu0 %v394_v4  ;;  %1379 = vmatpush3.bf16.msra.mxu1 %v394_v4  ;;  %v1402_v11 = vld [vmem:[%s1469_s25 + $0x40] sm:$0xff]   ;;  %v1404_v13 = vld [vmem:[%s1469_s25 + $0x50] sm:$0xff]   ;;  %v1405_v14 = vld [vmem:[%s1469_s25 + $0x58] sm:$0xff]   ;;  %v860_v31 = vadd.s32 40, %v1503_v23  ;;  %v865_v33 = vadd.s32 80, %v1503_v23  ;;  %v1521_v34 = vadd.s32 %v1508_v26, %v857_v24  ;;  %v1524_v35 = vadd.s32 %v1508_v26, %v858_v25  ;;  %s1220_s6 = sshll.u32 %s1927_s16, 3 }
  0x12   : > { %1343 = vmatprep.subr.bf16.mxu0 %v1393_v5  ;;  %1378 = vmatprep.subr.bf16.mxu1 %v1393_v5  ;;  %v1406_v15 = vld [vmem:[%s1469_s25 + $0x60] sm:$0xff]   ;;  %v1399_v16 = vld [vmem:[%s1469_s25 + $0x28] sm:$0xff]   ;;  %v1400_v17 = vld [vmem:[%s1469_s25 + $0x30] sm:$0xff]   ;;  %v863_v36 = vadd.s32 64, %v1503_v23  ;;  %v866_v37 = vadd.s32 88, %v1503_v23  ;;  %v1529_v38 = vadd.s32 %v1508_v26, %v856_v27  ;;  %v1532_v39 = vadd.s32 %v1508_v26, %v861_v28  ;;  %s211_s9 = scalar_lea.vmem %s1923_s4, %s1220_s6 }
  0x13   : > { %1345 = vmatprep.mubr.msk.bf16.mxu0 %vm340_vm2, %v1394_v6  ;;  %1361 = vmatprep.mubr.msk.bf16.mxu1 %vm340_vm2, %v1402_v11  ;;  %v1407_v18 = vld [vmem:[%s1469_s25 + $0x68] sm:$0xff]   ;;  %v1408_v19 = vld [vmem:[%s1469_s25 + $0x70] sm:$0xff]   ;;  %v1401_v20 = vld [vmem:[%s1469_s25 + $0x38] sm:$0xff]   ;;  %v1535_v40 = vadd.s32 %v1508_v26, %v859_v29  ;;  %v864_v41 = vadd.s32 72, %v1503_v23  ;;  %v1539_v42 = vadd.s32 %v1508_v26, %v862_v30  ;;  %v1542_v43 = vadd.s32 %v1508_v26, %v860_v31 }
  0x14   : > { %v1409_v21 = vld [vmem:[%s1469_s25 + $0x78] sm:$0xff]   ;;  %v869_v44 = vadd.s32 112, %v1503_v23  ;;  %v867_v45 = vadd.s32 96, %v1503_v23  ;;  %vm920_vm4 = vcmp.lt.s32.totalorder %v1517_v32, 512  ;;  %v1553_v47 = vadd.s32 %v1508_v26, %v865_v33 }
  0x15   : > { %1344 = vmatpush3.bf16.msra.mxu0 %v1393_v5  ;;  %1380 = vmatpush3.bf16.msra.mxu1 %v1393_v5  ;;  %v873_v48 = vadd.s32 144, %v1503_v23  ;;  %v871_v49 = vadd.s32 128, %v1503_v23  ;;  %v870_v50 = vadd.s32 120, %v1503_v23  ;;  %v1559_v51 = vadd.s32 %v1508_v26, %v863_v36 }
  0x16   : > { %v1562_v52 = vadd.s32 %v1508_v26, %v866_v37  ;;  %v874_v53 = vadd.s32 152, %v1503_v23  ;;  %v868_v54 = vadd.s32 104, %v1503_v23  ;;  %v1567_v56 = vadd.s32 %v1508_v26, %v864_v41 }
  0x17   : > { %v872_v57 = vadd.s32 136, %v1503_v23  ;;  %v877_v58 = vadd.s32 176, %v1503_v23  ;;  %v875_v59 = vadd.s32 160, %v1503_v23  ;;  %vm922_vm5 = vcmp.lt.s32.totalorder %v1521_v34, 512 }
  0x18   : > { %1346 = vmatmul.mubr.msk.bf16.vlgmr.msra.gmra.mxu0 %vm340_vm2, %v1395_v7  ;;  %1362 = vmatmul.mubr.msk.bf16.vlgmr.msra.gmra.mxu1 %vm340_vm2, %v1403_v12  ;;  %v1575_v61 = vadd.s32 %v1508_v26, %v869_v44  ;;  %v1578_v62 = vadd.s32 %v1508_v26, %v867_v45  ;;  %v878_v63 = vadd.s32 184, %v1503_v23  ;;  %v1582_v1 = vadd.s32 %v1508_v26, %v873_v48 }
  0x19   : > { %1349 = vmatprep.mubr.msk.bf16.mxu0 %vm340_vm2, %v1396_v8  ;;  %1365 = vmatprep.mubr.msk.bf16.mxu1 %vm340_vm2, %v1404_v13  ;;  %v1585_v2 = vadd.s32 %v1508_v26, %v871_v49  ;;  %v1588_v3 = vadd.s32 %v1508_v26, %v870_v50  ;;  %v876_v4 = vadd.s32 168, %v1503_v23  ;;  %vm923_vm7 = vcmp.lt.s32.totalorder %v1524_v35, 512 }
  0x1a   : > { %vm921_vm8 = vcmp.lt.s32.totalorder %v1529_v38, 512  ;;  %v1595_v7 = vadd.s32 %v1508_v26, %v874_v53  ;;  %v1598_v8 = vadd.s32 %v1508_v26, %v868_v54  ;;  %v1604_v11 = vadd.s32 %v1508_v26, %v877_v58 }
  0x1b   : > { %v1607_v12 = vadd.s32 %v1508_v26, %v875_v59  ;;  %v881_v13 = vadd.s32 208, %v1503_v23  ;;  %v882_v22 = vadd.s32 216, %v1503_v23  ;;  %vm924_vm11 = vcmp.lt.s32.totalorder %v1535_v40, 512 }
  0x1c   : > { %v1628_v27 = vadd.s32 200, %v1503_v23  ;;  %vm926_vm14 = vcmp.lt.s32.totalorder %v1532_v39, 512  ;;  %vm925_vm15 = vcmp.lt.s32.totalorder %v1542_v43, 512 }
  0x1d   : > { %v1635_v36 = vadd.s32 %v1508_v26, %v881_v13  ;;  %v1651_v58 = vadd.s32 %v1508_v26, %v882_v22 }
  0x20   : > { %1350 = vmatmul.mubr.msk.bf16.gmra.mxu0 %vm340_vm2, %v1397_v9  ;;  %1366 = vmatmul.mubr.msk.bf16.gmra.mxu1 %vm340_vm2, %v1405_v14 }
  0x21   : > { %1353 = vmatprep.mubr.msk.bf16.mxu0 %vm340_vm2, %v1398_v10  ;;  %1369 = vmatprep.mubr.msk.bf16.mxu1 %vm340_vm2, %v1406_v15  ;;  %v1601_v10 = vadd.s32 %v1508_v26, %v872_v57 }
  0x28   : > { %1354 = vmatmul.mubr.msk.bf16.gmra.mxu0 %vm340_vm2, %v1399_v16  ;;  %1370 = vmatmul.mubr.msk.bf16.gmra.mxu1 %vm340_vm2, %v1407_v18  ;;  %v1612_v16 = vadd.s32 %v1508_v26, %v878_v63 }
  0x29   : > { %1357 = vmatprep.mubr.msk.bf16.mxu0 %vm340_vm2, %v1400_v17  ;;  %1373 = vmatprep.mubr.msk.bf16.mxu1 %vm340_vm2, %v1408_v19 }
  0x30   : > { %1358 = vmatmul.mubr.msk.bf16.gmra.mxu0 %vm340_vm2, %v1401_v20  ;;  %1374 = vmatmul.mubr.msk.bf16.gmra.mxu1 %vm340_vm2, %v1409_v21  ;;  %v1622_v20 = vadd.s32 %v1508_v26, %v876_v4  ;;  %v879_v21 = vadd.s32 192, %v1503_v23  ;;  %vm927_vm2 = vcmp.lt.s32.totalorder %v1539_v42, 512 }
  0x32   : > { %v1645_v54 = vadd.s32 %v1508_v26, %v879_v21 }
  0xd8   : > { %v1347_v55 = vpop.f32.mrf.mxu0  ;;  %v1363_v19 = vpop.f32.mrf.mxu1 }
  0xd9   : > { %v566_v60 = vsub.f32 %v1347_v55, %v1549_v46  ;;  %v582_v31 = vsub.f32 %v1363_v19, %v1549_v46 }
  0xda   : > { %v430_v0 = vpop.f32.mrf.mxu0  ;;  %v1632_v33 = vpop.f32.mrf.mxu1 }
  0xdb   : > { %v598_v5 = vmax.f32 %v566_v60, 0.0  ;;  %v564_v6 = vsub.f32 %v430_v0, %v1549_v46  ;;  %v614_v50 = vmax.f32 %v582_v31, 0.0  ;;  %v580_v40 = vsub.f32 %v1632_v33, %v1549_v46 }
  0xdc   : > { %v1348_v9 = vpop.f32.mrf.mxu0  ;;  %v1642_v53 = vpop.f32.mrf.mxu1 }
  0xdd   : > { %vm630_vm9 = vcmp.ge.f32.partialorder %v598_v5, 0.1  ;;  %v596_v14 = vmax.f32 %v564_v6, 0.0  ;;  %v567_v15 = vsub.f32 %v1348_v9, %v1549_v46  ;;  %vm646_vm0 = vcmp.ge.f32.partialorder %v614_v50, 0.1 }
  0xde   : > { %v662_v17 = vsel %vm630_vm9, %v598_v5, 0.0  ;;  %v433_v18 = vpop.f32.mrf.mxu0  ;;  %v1658_v0 = vpop.f32.mrf.mxu1  ;;  %v1673_v21 = vsel %vm646_vm0, %v614_v50, 0.0  ;;  %vm929_vm9 = vcmp.lt.s32.totalorder %v1567_v56, 512  ;;  %vm932_vm0 = vcmp.lt.s32.totalorder %v1578_v62, 512 }
  0xdf   : > { %v1293_v24 = vpack.c.bf16 %v662_v17, %v662_v17  ;;  %vm628_vm10 = vcmp.ge.f32.partialorder %v596_v14, 0.1  ;;  %v599_v25 = vmax.f32 %v567_v15, 0.0  ;;  %v565_v29 = vsub.f32 %v433_v18, %v1549_v46 }
  0xe0   : > { %v660_v28 = vsel %vm628_vm10, %v596_v14, 0.0  ;;  %v1351_v30 = vpop.f32.mrf.mxu0  ;;  %v1018_v59 = vsel %vm922_vm5, %v662_v17, 0.0  ;;  %v1668_v17 = vpop.f32.mrf.mxu1  ;;  %vm928_vm5 = vcmp.lt.s32.totalorder %v1559_v51, 512 }
  0xe1   : > { %823 = vst.msk [vmem:[%s1619_s5 + $0x8] sm:$0xf] %vm820_vm3, %v1293_v24  ;;  %v1291_v37 = vpack.c.bf16 %v660_v28, %v660_v28  ;;  %v1016_v41 = vsel %vm920_vm4, %v660_v28, 0.0  ;;  %vm631_vm12 = vcmp.ge.f32.partialorder %v599_v25, 0.1  ;;  %v570_v44 = vsub.f32 %v1351_v30, %v1549_v46 }
  0xe2   : > { %v663_v45 = vsel %vm631_vm12, %v599_v25, 0.0  ;;  %v597_v48 = vmax.f32 %v565_v29, 0.0  ;;  %v446_v49 = vpop.f32.mrf.mxu0  ;;  %v1049_v60 = vsel %vm1048_vm6, %v1016_v41, 0.0  ;;  %v1052_v35 = vsel %vm1048_vm6, %v1018_v59, 0.0  ;;  %v1678_v28 = vpop.f32.mrf.mxu1 }
  0xe3   : > { %821 = vst.msk [vmem:[%s1619_s5] sm:$0xf] %vm820_vm3, %v1291_v37  ;;  %v1294_v55 = vpack.c.bf16 %v663_v45, %v663_v45  ;;  %v602_v57 = vmax.f32 %v570_v44, 0.0  ;;  %v568_v32 = vsub.f32 %v446_v49, %v1549_v46  ;;  %v1019_v6 = vsel %vm923_vm7, %v663_v45, 0.0 }
  0xe4   : > { %vm629_vm13 = vcmp.ge.f32.partialorder %v597_v48, 0.1  ;;  %v1352_v63 = vpop.f32.mrf.mxu0  ;;  %v1054_v29 = vsel %vm1048_vm6, %v1019_v6, 0.0  ;;  %vm930_vm7 = vcmp.lt.s32.totalorder %v1553_v47, 512  ;;  %vm931_vm12 = vcmp.lt.s32.totalorder %v1562_v52, 512 }
  0xe5   : > { %824 = vst.msk [vmem:[%s1619_s5 + $0xc] sm:$0xf] %vm820_vm3, %v1294_v55  ;;  %v661_v4 = vsel %vm629_vm13, %v597_v48, 0.0  ;;  %vm634_vm1 = vcmp.ge.f32.partialorder %v602_v57, 0.1  ;;  %v600_v5 = vmax.f32 %v568_v32, 0.0  ;;  %v571_v34 = vsub.f32 %v1352_v63, %v1549_v46  ;;  %v1698_v63 = vpop.f32.mrf.mxu1 }
  0xe6   : > { %v1292_v9 = vpack.c.bf16 %v661_v4, %v661_v4  ;;  %v1017_v13 = vsel %vm921_vm8, %v661_v4, 0.0  ;;  %v666_v14 = vsel %vm634_vm1, %v602_v57, 0.0  ;;  %v449_v15 = vpop.f32.mrf.mxu0  ;;  %v1309_v48 = vpack.c.bf16 %v1673_v21, %v1673_v21 }
  0xe7   : > { %v1050_v18 = vsel %vm1048_vm6, %v1017_v13, 0.0  ;;  %v1297_v19 = vpack.c.bf16 %v666_v14, %v666_v14  ;;  %vm632_vm4 = vcmp.ge.f32.partialorder %v600_v5, 0.1  ;;  %v603_v24 = vmax.f32 %v571_v34, 0.0 }
  0xe8   : > { %822 = vst.msk [vmem:[%s1619_s5 + $0x4] sm:$0xf] %vm820_vm3, %v1292_v9  ;;  %v1051_v38 = vadd.f32 %v1050_v18, %v1049_v60  ;;  %v664_v22 = vsel %vm632_vm4, %v600_v5, 0.0  ;;  %v1355_v25 = vpop.f32.mrf.mxu0  ;;  %v569_v31 = vsub.f32 %v449_v15, %v1549_v46  ;;  %839 = vst.msk [vmem:[%s1619_s5 + $0x48] sm:$0xf] %vm820_vm3, %v1309_v48  ;;  %v1702_v4 = vadd.s32 %v1508_v26, %v1628_v27 }
  0xe9   : > { %827 = vst.msk [vmem:[%s1619_s5 + $0x18] sm:$0xf] %vm820_vm3, %v1297_v19  ;;  %v1295_v30 = vpack.c.bf16 %v664_v22, %v664_v22  ;;  %v574_v37 = vsub.f32 %v1355_v25, %v1549_v46  ;;  %v1020_v44 = vsel %vm924_vm11, %v664_v22, 0.0  ;;  %vm635_vm8 = vcmp.ge.f32.partialorder %v603_v24, 0.1 }
  0xea   : > { %v1053_v41 = vadd.f32 %v1052_v35, %v1051_v38  ;;  %v462_v45 = vpop.f32.mrf.mxu0  ;;  %v667_v49 = vsel %vm635_vm8, %v603_v24, 0.0  ;;  %v601_v50 = vmax.f32 %v569_v31, 0.0  ;;  %v1056_v5 = vsel %vm1048_vm6, %v1020_v44, 0.0 }
  0xeb   : > { %825 = vst.msk [vmem:[%s1619_s5 + $0x10] sm:$0xf] %vm820_vm3, %v1295_v30  ;;  %v606_v55 = vmax.f32 %v574_v37, 0.0  ;;  %v572_v57 = vsub.f32 %v462_v45, %v1549_v46  ;;  %v1298_v59 = vpack.c.bf16 %v667_v49, %v667_v49  ;;  %v1022_v27 = vsel %vm926_vm14, %v666_v14, 0.0 }
  0xec   : > { %v1055_v32 = vadd.f32 %v1054_v29, %v1053_v41  ;;  %v1356_v60 = vpop.f32.mrf.mxu0  ;;  %vm633_vm10 = vcmp.ge.f32.partialorder %v601_v50, 0.1  ;;  %v1023_v38 = vsel %vm927_vm2, %v667_v49, 0.0  ;;  %v1717_v29 = vpop.f32.mrf.mxu1  ;;  %v1060_v30 = vsel %vm1048_vm6, %v1022_v27, 0.0 }
  0xed   : > { %vm638_vm11 = vcmp.ge.f32.partialorder %v606_v55, 0.1  ;;  %v604_v34 = vmax.f32 %v572_v57, 0.0  ;;  %828 = vst.msk [vmem:[%s1619_s5 + $0x1c] sm:$0xf] %vm820_vm3, %v1298_v59  ;;  %v665_v9 = vsel %vm633_vm10, %v601_v50, 0.0  ;;  %v575_v15 = vsub.f32 %v1356_v60, %v1549_v46 }
  0xee   : > { %v1057_v6 = vadd.f32 %v1056_v5, %v1055_v32  ;;  %v670_v13 = vsel %vm638_vm11, %v606_v55, 0.0  ;;  %v465_v33 = vpop.f32.mrf.mxu0  ;;  %v1296_v18 = vpack.c.bf16 %v665_v9, %v665_v9  ;;  %v1021_v19 = vsel %vm925_vm15, %v665_v9, 0.0  ;;  %v1735_v59 = vpop.f32.mrf.mxu1 }
  0xef   : > { %v1301_v35 = vpack.c.bf16 %v670_v13, %v670_v13  ;;  %v1058_v22 = vsel %vm1048_vm6, %v1021_v19, 0.0  ;;  %vm636_vm13 = vcmp.ge.f32.partialorder %v604_v34, 0.1  ;;  %v607_v24 = vmax.f32 %v575_v15, 0.0 }
  0xf0   : > { %v1359_v25 = vpop.f32.mrf.mxu0  ;;  %826 = vst.msk [vmem:[%s1619_s5 + $0x14] sm:$0xf] %vm820_vm3, %v1296_v18  ;;  %v1059_v39 = vadd.f32 %v1058_v22, %v1057_v6  ;;  %v668_v43 = vsel %vm636_vm13, %v604_v34, 0.0  ;;  %v573_v14 = vsub.f32 %v465_v33, %v1549_v46  ;;  %v1062_v44 = vsel %vm1048_vm6, %v1023_v38, 0.0  ;;  %v1747_v19 = vpop.f32.mrf.mxu1 }
  0xf1   : > { %831 = vst.msk [vmem:[%s1619_s5 + $0x28] sm:$0xf] %vm820_vm3, %v1301_v35  ;;  %v578_v42 = vsub.f32 %v1359_v25, %v1549_v46  ;;  %v1299_v31 = vpack.c.bf16 %v668_v43, %v668_v43  ;;  %v1024_v37 = vsel %vm928_vm5, %v668_v43, 0.0  ;;  %vm639_vm14 = vcmp.ge.f32.partialorder %v607_v24, 0.1 }
  0xf2   : > { %v478_v41 = vpop.f32.mrf.mxu0  ;;  %v1061_v45 = vadd.f32 %v1060_v30, %v1059_v39  ;;  %v671_v48 = vsel %vm639_vm14, %v607_v24, 0.0  ;;  %v605_v49 = vmax.f32 %v573_v14, 0.0  ;;  %v1026_v50 = vsel %vm930_vm7, %v670_v13, 0.0 }
  0xf3   : > { %829 = vst.msk [vmem:[%s1619_s5 + $0x20] sm:$0xf] %vm820_vm3, %v1299_v31  ;;  %v1302_v55 = vpack.c.bf16 %v671_v48, %v671_v48  ;;  %v610_v57 = vmax.f32 %v578_v42, 0.0  ;;  %vm934_vm15 = vcmp.lt.s32.totalorder %v1575_v61, 512  ;;  %v576_v51 = vsub.f32 %v478_v41, %v1549_v46 }
  0xf4   : > { %v1360_v32 = vpop.f32.mrf.mxu0  ;;  %v1063_v60 = vadd.f32 %v1062_v44, %v1061_v45  ;;  %v1064_v5 = vsel %vm1048_vm6, %v1024_v37, 0.0  ;;  %vm637_vm1 = vcmp.ge.f32.partialorder %v605_v49, 0.1  ;;  %v612_v34 = vmax.f32 %v580_v40, 0.0  ;;  %v1772_v45 = vpop.f32.mrf.mxu1 }
  0xf5   : > { %832 = vst.msk [vmem:[%s1619_s5 + $0x2c] sm:$0xf] %vm820_vm3, %v1302_v55  ;;  %v669_v47 = vsel %vm637_vm1, %v605_v49, 0.0  ;;  %vm642_vm2 = vcmp.ge.f32.partialorder %v610_v57, 0.1  ;;  %v608_v6 = vmax.f32 %v576_v51, 0.0  ;;  %v579_v9 = vsub.f32 %v1360_v32, %v1549_v46 }
  0xf6   : > { %v1065_v13 = vadd.f32 %v1064_v5, %v1063_v60  ;;  %v1300_v15 = vpack.c.bf16 %v669_v47, %v669_v47  ;;  %v1025_v33 = vsel %vm929_vm9, %v669_v47, 0.0  ;;  %v674_v27 = vsel %vm642_vm2, %v610_v57, 0.0  ;;  %v481_v24 = vpop.f32.mrf.mxu0  ;;  %v1789_v47 = vpop.f32.mrf.mxu1 }
  0xf7   : > { %vm935_vm4 = vcmp.lt.s32.totalorder %v1588_v3, 512  ;;  %vm933_vm5 = vcmp.lt.s32.totalorder %v1598_v8, 512  ;;  %v1066_v40 = vsel %vm1048_vm6, %v1025_v33, 0.0  ;;  %v1305_v18 = vpack.c.bf16 %v674_v27, %v674_v27 }
  0xf8   : > { %vm938_vm7 = vcmp.lt.s32.totalorder %v1582_v1, 512  ;;  %vm640_vm8 = vcmp.ge.f32.partialorder %v608_v6, 0.1  ;;  %v1750_v35 = vadd.s32 224, %v1503_v23  ;;  %v1027_v56 = vsel %vm931_vm12, %v671_v48, 0.0  ;;  %v1810_v1 = vpop.f32.mrf.mxu1 }
  0xf9   : > { %830 = vst.msk [vmem:[%s1619_s5 + $0x24] sm:$0xf] %vm820_vm3, %v1300_v15  ;;  %v1067_v38 = vadd.f32 %v1066_v40, %v1065_v13  ;;  %v672_v22 = vsel %vm640_vm8, %v608_v6, 0.0  ;;  %vm644_vm9 = vcmp.ge.f32.partialorder %v612_v34, 0.1  ;;  %v1068_v25 = vsel %vm1048_vm6, %v1026_v50, 0.0 }
  0xfa   : > { %835 = vst.msk [vmem:[%s1619_s5 + $0x38] sm:$0xf] %vm820_vm3, %v1305_v18  ;;  %v1303_v39 = vpack.c.bf16 %v672_v22, %v672_v22  ;;  %v676_v43 = vsel %vm644_vm9, %v612_v34, 0.0  ;;  %vm936_vm10 = vcmp.lt.s32.totalorder %v1585_v2, 512  ;;  %v611_v14 = vmax.f32 %v579_v9, 0.0 }
  0xfb   : > { %v1069_v42 = vadd.f32 %v1068_v25, %v1067_v38  ;;  %v1028_v52 = vsel %vm932_vm0, %v672_v22, 0.0  ;;  %v1307_v30 = vpack.c.bf16 %v676_v43, %v676_v43  ;;  %vm937_vm11 = vcmp.lt.s32.totalorder %v1601_v10, 512 }
  0xfc   : > { %v1764_v31 = vadd.s32 232, %v1503_v23  ;;  %v1070_v37 = vsel %vm1048_vm6, %v1027_v56, 0.0  ;;  %833 = vst.msk [vmem:[%s1619_s5 + $0x30] sm:$0xf] %vm820_vm3, %v1303_v39  ;;  %vm643_vm12 = vcmp.ge.f32.partialorder %v611_v14, 0.1  ;;  %v583_v41 = vsub.f32 %v1642_v53, %v1549_v46 }
  0xfd   : > { %v577_v44 = vsub.f32 %v481_v24, %v1549_v46  ;;  %v1071_v62 = vadd.f32 %v1070_v37, %v1069_v42  ;;  %837 = vst.msk [vmem:[%s1619_s5 + $0x40] sm:$0xf] %vm820_vm3, %v1307_v30  ;;  %v675_v48 = vsel %vm643_vm12, %v611_v14, 0.0  ;;  %v581_v49 = vsub.f32 %v1658_v0, %v1549_v46 }
  0xfe   : > { %v586_v50 = vsub.f32 %v1668_v17, %v1549_v46  ;;  %v1072_v55 = vsel %vm1048_vm6, %v1028_v52, 0.0  ;;  %v1306_v57 = vpack.c.bf16 %v675_v48, %v675_v48  ;;  %v615_v51 = vmax.f32 %v583_v41, 0.0 }
  0xff   : > { %v609_v53 = vmax.f32 %v577_v44, 0.0  ;;  %v1030_v32 = vsel %vm934_vm15, %v674_v27, 0.0  ;;  %v1073_v60 = vadd.f32 %v1072_v55, %v1071_v62  ;;  %v613_v5 = vmax.f32 %v581_v49, 0.0 }
 0x100   : > { %v618_v34 = vmax.f32 %v586_v50, 0.0  ;;  %836 = vst.msk [vmem:[%s1619_s5 + $0x3c] sm:$0xf] %vm820_vm3, %v1306_v57  ;;  %vm647_vm13 = vcmp.ge.f32.partialorder %v615_v51, 0.1  ;;  %v584_v0 = vsub.f32 %v1678_v28, %v1549_v46  ;;  %v587_v17 = vsub.f32 %v1698_v63, %v1549_v46 }
 0x101   : > { %vm641_vm0 = vcmp.ge.f32.partialorder %v609_v53, 0.1  ;;  %v679_v6 = vsel %vm647_vm13, %v615_v51, 0.0  ;;  %vm939_vm14 = vcmp.lt.s32.totalorder %v1595_v7, 512  ;;  %vm645_vm15 = vcmp.ge.f32.partialorder %v613_v5, 0.1 }
 0x102   : > { %v673_v61 = vsel %vm641_vm0, %v609_v53, 0.0  ;;  %vm650_vm1 = vcmp.ge.f32.partialorder %v618_v34, 0.1  ;;  %vm940_vm2 = vcmp.lt.s32.totalorder %v1607_v12, 512  ;;  %v1031_v9 = vsel %vm935_vm4, %v675_v48, 0.0 }
 0x103   : > { %v1310_v13 = vpack.c.bf16 %v679_v6, %v679_v6  ;;  %v1304_v28 = vpack.c.bf16 %v673_v61, %v673_v61  ;;  %v1029_v63 = vsel %vm933_vm5, %v673_v61, 0.0  ;;  %v1034_v15 = vsel %vm938_vm7, %v1673_v21, 0.0 }
 0x104   : > { %v1074_v33 = vsel %vm1048_vm6, %v1029_v63, 0.0  ;;  %v677_v27 = vsel %vm645_vm15, %v613_v5, 0.0  ;;  %v1801_v40 = vsel %vm650_vm1, %v618_v34, 0.0  ;;  %v1076_v18 = vsel %vm1048_vm6, %v1030_v32, 0.0 }
 0x105   : > { %840 = vst.msk [vmem:[%s1619_s5 + $0x4c] sm:$0xf] %vm820_vm3, %v1310_v13  ;;  %834 = vst.msk [vmem:[%s1619_s5 + $0x34] sm:$0xf] %vm820_vm3, %v1304_v28  ;;  %v1075_v3 = vadd.f32 %v1074_v33, %v1073_v60  ;;  %v1308_v8 = vpack.c.bf16 %v677_v27, %v677_v27  ;;  %v1313_v56 = vpack.c.bf16 %v1801_v40, %v1801_v40  ;;  %v1032_v21 = vsel %vm936_vm10, %v676_v43, 0.0 }
 0x106   : > { %v1078_v38 = vsel %vm1048_vm6, %v1031_v9, 0.0  ;;  %vm942_vm4 = vcmp.lt.s32.totalorder %v1604_v11, 512  ;;  %v616_v22 = vmax.f32 %v584_v0, 0.0  ;;  %v619_v24 = vmax.f32 %v587_v17, 0.0 }
 0x107   : > { %vm941_vm5 = vcmp.lt.s32.totalorder %v1622_v20, 512  ;;  %v1077_v25 = vadd.f32 %v1076_v18, %v1075_v3  ;;  %838 = vst.msk [vmem:[%s1619_s5 + $0x44] sm:$0xf] %vm820_vm3, %v1308_v8  ;;  %v1033_v39 = vsel %vm937_vm11, %v677_v27, 0.0  ;;  %843 = vst.msk [vmem:[%s1619_s5 + $0x58] sm:$0xf] %vm820_vm3, %v1313_v56  ;;  %v585_v2 = vsub.f32 %v1717_v29, %v1549_v46  ;;  %v542_v29 = vpop.f32.mrf.mxu1 }
 0x108   : > { %v590_v43 = vsub.f32 %v1735_v59, %v1549_v46  ;;  %vm648_vm7 = vcmp.ge.f32.partialorder %v616_v22, 0.1  ;;  %vm651_vm8 = vcmp.ge.f32.partialorder %v619_v24, 0.1  ;;  %vm943_vm9 = vcmp.lt.s32.totalorder %v1612_v16, 512 }
 0x109   : > { %v588_v14 = vsub.f32 %v1747_v19, %v1549_v46  ;;  %v591_v10 = vsub.f32 %v1772_v45, %v1549_v46  ;;  %v1079_v42 = vadd.f32 %v1078_v38, %v1077_v25  ;;  %v680_v52 = vsel %vm648_vm7, %v616_v22, 0.0  ;;  %v1376_v5 = vpop.f32.mrf.mxu1 }
 0x10a   : > { %v683_v30 = vsel %vm651_vm8, %v619_v24, 0.0  ;;  %v617_v37 = vmax.f32 %v585_v2, 0.0  ;;  %v1080_v41 = vsel %vm1048_vm6, %v1032_v21, 0.0  ;;  %v1311_v59 = vpack.c.bf16 %v680_v52, %v680_v52 }
 0x10b   : > { %v1314_v44 = vpack.c.bf16 %v683_v30, %v683_v30  ;;  %v1834_v62 = vadd.s32 240, %v1503_v23  ;;  %v1084_v48 = vsel %vm1048_vm6, %v1034_v15, 0.0  ;;  %v1081_v49 = vadd.f32 %v1080_v41, %v1079_v42  ;;  %v545_v33 = vpop.f32.mrf.mxu1 }
 0x10c   : > { %v1082_v19 = vsel %vm1048_vm6, %v1033_v39, 0.0  ;;  %vm649_vm10 = vcmp.ge.f32.partialorder %v617_v37, 0.1  ;;  %841 = vst.msk [vmem:[%s1619_s5 + $0x50] sm:$0xf] %vm820_vm3, %v1311_v59  ;;  %v622_v50 = vmax.f32 %v590_v43, 0.0  ;;  %v589_v34 = vsub.f32 %v1789_v47, %v1549_v46 }
 0x10d   : > { %844 = vst.msk [vmem:[%s1619_s5 + $0x5c] sm:$0xf] %vm820_vm3, %v1314_v44  ;;  %v681_v45 = vsel %vm649_vm10, %v617_v37, 0.0  ;;  %v620_v55 = vmax.f32 %v588_v14, 0.0  ;;  %vm944_vm11 = vcmp.lt.s32.totalorder %v1645_v54, 512  ;;  %v623_v57 = vmax.f32 %v591_v10, 0.0 }
 0x10e   : > { %v1035_v51 = vsel %vm939_vm14, %v679_v6, 0.0  ;;  %v1083_v53 = vadd.f32 %v1082_v19, %v1081_v49  ;;  %v1036_v32 = vsel %vm940_vm2, %v680_v52, 0.0  ;;  %v1312_v60 = vpack.c.bf16 %v681_v45, %v681_v45 }
 0x10f   : > { %vm654_vm12 = vcmp.ge.f32.partialorder %v622_v50, 0.1  ;;  %vm652_vm13 = vcmp.ge.f32.partialorder %v620_v55, 0.1  ;;  %vm945_vm0 = vcmp.lt.s32.totalorder %v1702_v4, 512  ;;  %v594_v0 = vsub.f32 %v1810_v1, %v1549_v46 }
 0x110   : > { %v1085_v17 = vadd.f32 %v1084_v48, %v1083_v53  ;;  %842 = vst.msk [vmem:[%s1619_s5 + $0x54] sm:$0xf] %vm820_vm3, %v1312_v60  ;;  %v686_v7 = vsel %vm654_vm12, %v622_v50, 0.0  ;;  %v684_v12 = vsel %vm652_vm13, %v620_v55, 0.0  ;;  %vm655_vm14 = vcmp.ge.f32.partialorder %v623_v57, 0.1 }
 0x111   : > { %v1086_v6 = vsel %vm1048_vm6, %v1035_v51, 0.0  ;;  %v1317_v61 = vpack.c.bf16 %v686_v7, %v686_v7  ;;  %vm946_vm15 = vcmp.lt.s32.totalorder %v1635_v36, 512  ;;  %v1315_v9 = vpack.c.bf16 %v684_v12, %v684_v12 }
 0x112   : > { %v886_v47 = vadd.s32 248, %v1503_v23  ;;  %v1038_v13 = vsel %vm942_vm4, %v1801_v40, 0.0  ;;  %v1087_v28 = vadd.f32 %v1086_v6, %v1085_v17  ;;  %v1037_v63 = vsel %vm941_vm5, %v681_v45, 0.0 }
 0x113   : > { %v687_v15 = vsel %vm655_vm14, %v623_v57, 0.0  ;;  %v1088_v27 = vsel %vm1048_vm6, %v1036_v32, 0.0  ;;  %847 = vst.msk [vmem:[%s1619_s5 + $0x68] sm:$0xf] %vm820_vm3, %v1317_v61  ;;  %845 = vst.msk [vmem:[%s1619_s5 + $0x60] sm:$0xf] %vm820_vm3, %v1315_v9  ;;  %v592_v20 = vsub.f32 %v542_v29, %v1549_v46  ;;  %v595_v8 = vsub.f32 %v1376_v5, %v1549_v46 }
 0x114   : > { %v1318_v18 = vpack.c.bf16 %v687_v15, %v687_v15  ;;  %vm947_vm1 = vcmp.lt.s32.totalorder %v1651_v58, 512  ;;  %v621_v23 = vmax.f32 %v589_v34, 0.0  ;;  %v626_v3 = vmax.f32 %v594_v0, 0.0 }
 0x115   : > { %v1089_v11 = vadd.f32 %v1088_v27, %v1087_v28  ;;  %v1039_v40 = vsel %vm943_vm9, %v683_v30, 0.0  ;;  %v1090_v56 = vsel %vm1048_vm6, %v1037_v63, 0.0  ;;  %v593_v1 = vsub.f32 %v545_v33, %v1549_v46 }
 0x116   : > { %848 = vst.msk [vmem:[%s1619_s5 + $0x6c] sm:$0xf] %vm820_vm3, %v1318_v18  ;;  %vm653_vm2 = vcmp.ge.f32.partialorder %v621_v23, 0.1  ;;  %vm658_vm4 = vcmp.ge.f32.partialorder %v626_v3, 0.1  ;;  %v916_v52 = vadd.s32 %v1508_v26, %v1750_v35  ;;  %v917_v59 = vadd.s32 %v1508_v26, %v1764_v31 }
 0x117   : > { %v1091_v21 = vadd.f32 %v1090_v56, %v1089_v11  ;;  %v685_v38 = vsel %vm653_vm2, %v621_v23, 0.0  ;;  %v690_v22 = vsel %vm658_vm4, %v626_v3, 0.0  ;;  %v624_v24 = vmax.f32 %v592_v20, 0.0 }
 0x118   : > { %v1092_v16 = vsel %vm1048_vm6, %v1038_v13, 0.0  ;;  %v1316_v25 = vpack.c.bf16 %v685_v38, %v685_v38  ;;  %v1321_v39 = vpack.c.bf16 %v690_v22, %v690_v22  ;;  %v627_v2 = vmax.f32 %v595_v8, 0.0 }
 0x119   : > { %v1093_v43 = vadd.f32 %v1092_v16, %v1091_v21  ;;  %v1040_v14 = vsel %vm944_vm11, %v684_v12, 0.0  ;;  %vm656_vm5 = vcmp.ge.f32.partialorder %v624_v24, 0.1  ;;  %v625_v10 = vmax.f32 %v593_v1, 0.0 }
 0x11a   : > { %v1094_v42 = vsel %vm1048_vm6, %v1039_v40, 0.0  ;;  %846 = vst.msk [vmem:[%s1619_s5 + $0x64] sm:$0xf] %vm820_vm3, %v1316_v25  ;;  %851 = vst.msk [vmem:[%s1619_s5 + $0x78] sm:$0xf] %vm820_vm3, %v1321_v39  ;;  %v688_v46 = vsel %vm656_vm5, %v624_v24, 0.0  ;;  %v918_v45 = vadd.s32 %v1508_v26, %v1834_v62  ;;  %v919_v31 = vadd.s32 %v1508_v26, %v886_v47 }
 0x11b   : > { %vm659_vm7 = vcmp.ge.f32.partialorder %v627_v2, 0.1  ;;  %v1095_v30 = vadd.f32 %v1094_v42, %v1093_v43  ;;  %v1041_v37 = vsel %vm945_vm0, %v685_v38, 0.0  ;;  %v1319_v54 = vpack.c.bf16 %v688_v46, %v688_v46 }
 0x11c   : > { %vm657_vm8 = vcmp.ge.f32.partialorder %v625_v10, 0.1  ;;  %v1096_v29 = vsel %vm1048_vm6, %v1040_v14, 0.0  ;;  %v691_v44 = vsel %vm659_vm7, %v627_v2, 0.0  ;;  %v1042_v48 = vsel %vm946_vm15, %v686_v7, 0.0 }
 0x11d   : > { %v689_v41 = vsel %vm657_vm8, %v625_v10, 0.0  ;;  %v1097_v35 = vadd.f32 %v1096_v29, %v1095_v30  ;;  %849 = vst.msk [vmem:[%s1619_s5 + $0x70] sm:$0xf] %vm820_vm3, %v1319_v54  ;;  %v1322_v4 = vpack.c.bf16 %v691_v44, %v691_v44  ;;  %v1098_v19 = vsel %vm1048_vm6, %v1041_v37, 0.0 }
 0x11e   : > { %v1320_v49 = vpack.c.bf16 %v689_v41, %v689_v41  ;;  %vm948_vm9 = vcmp.lt.s32.totalorder %v916_v52, 512  ;;  %v1043_v50 = vsel %vm947_vm1, %v687_v15, 0.0  ;;  %v1100_v36 = vsel %vm1048_vm6, %v1042_v48, 0.0 }
 0x11f   : > { %v1099_v55 = vadd.f32 %v1098_v19, %v1097_v35  ;;  %852 = vst.msk [vmem:[%s1619_s5 + $0x7c] sm:$0xf] %vm820_vm3, %v1322_v4  ;;  %vm949_vm10 = vcmp.lt.s32.totalorder %v917_v59, 512  ;;  %v1044_v51 = vsel %vm948_vm9, %v688_v46, 0.0  ;;  %v1102_v53 = vsel %vm1048_vm6, %v1043_v50, 0.0 }
 0x120   : > { %850 = vst.msk [vmem:[%s1619_s5 + $0x74] sm:$0xf] %vm820_vm3, %v1320_v49  ;;  %vm950_vm11 = vcmp.lt.s32.totalorder %v918_v45, 512  ;;  %v1045_v32 = vsel %vm949_vm10, %v689_v41, 0.0  ;;  %v1104_v58 = vsel %vm1048_vm6, %v1044_v51, 0.0  ;;  %vm951_vm12 = vcmp.lt.s32.totalorder %v919_v31, 512 }
 0x121   : > { %v1101_v57 = vadd.f32 %v1100_v36, %v1099_v55  ;;  %v1046_v60 = vsel %vm950_vm11, %v690_v22, 0.0  ;;  %v1106_v34 = vsel %vm1048_vm6, %v1045_v32, 0.0  ;;  %v1047_v0 = vsel %vm951_vm12, %v691_v44, 0.0 }
 0x122   : > { %v1108_v26 = vsel %vm1048_vm6, %v1046_v60, 0.0  ;;  %v1110_v12 = vsel %vm1048_vm6, %v1047_v0, 0.0 }
 0x123   : > { %v1103_v62 = vadd.f32 %v1102_v53, %v1101_v57 }
 0x125   : > { %v1105_v5 = vadd.f32 %v1104_v58, %v1103_v62 }
 0x127   : > { %v1107_v17 = vadd.f32 %v1106_v34, %v1105_v5 }
 0x129   : > { %v1109_v7 = vadd.f32 %v1108_v26, %v1107_v17 }
 0x12b   : > { %v1111_v6 = vadd.f32 %v1110_v12, %v1109_v7 }
 0x12d   : > { %1112 = vadd.xlane.f32.xlu0 %v1111_v6 }
 0x1b6   : > { %v1113_v61 = vpop.xlane.xlu0 %1112 }
 0x1b7   : > { %v1114_v9 = vrot.slane %v1113_v61, 4 }
 0x1b9   : > { %v1115_v47 = vadd.f32 %v1114_v9, %v1113_v61 }
 0x1bb   : > { %v1116_v13 = vrot.slane %v1115_v47, 2 }
 0x1bd   : > { %v1117_v28 = vadd.f32 %v1116_v13, %v1115_v47 }
 0x1bf   : > { %v1118_v63 = vrot.slane %v1117_v28, 1 }
 0x1c1   : > { %v1119_v15 = vadd.f32 %v1118_v63, %v1117_v28 }
 0x1c3   : > { %1381 = vpush %v1119_v15 }
 0x1f4   : > { %s1382_s10 = spop %1381 }
 0x1f5   : > { %v1121_v33 = vstv %s1382_s10 }
 0x1f6   : > { %1123 = vst [vmem:[%s211_s9] sm:$0xff] %v1121_v33 }
 0x1f7 PF: > { %s15_s15 = sadd.s32 1, %s1416_s15  }
 0x1f8   : > { %p12_p5 = scmp.ge.s32.totalorder %s15_s15, 4  }
 0x1fa   :  { %14 = sbr.rel (!%p12_p5) target bundleno = 1 (0x1), region = 74 }

// kernel: pilot_forward.8
= control target key start
LH: loop header
LB: loop body
LE: loop exit
PB: predicated region body
PF: predicated region fallthrough
CT: control target
= control target key end

     0   :  { %v716_v0 = vmov 0   ;;  %vm202_vm0 = vcmask 719872   ;;  %vm224_vm1 = vcmask 1043456   ;;  %vm436_vm4 = vcmask 289792   ;;  %s977_s1 = inlined_call_operand.vmem [shape: bf16[216,36], index: 1, kind: input, shape index: {}]   ;;  %s978_s0 = inlined_call_operand.vmem [shape: bf16[112,216], index: 0, kind: input, shape index: {}]   ;;  %s979_s2 = inlined_call_operand.vmem [shape: f32[1,36], index: 2, kind: input, shape index: {}]   ;;  %s980_s3 = inlined_call_operand.vmem [shape: bf16[112,36], index: 3, kind: output, shape index: {0}]   ;;  %s981_s4 = inlined_call_operand.vmem [shape: f32[1,8,128], index: 4, kind: output, shape index: {1}]  }
   0x1   :  { %228 = vmatprep.subr.bf16.mxu0 %v716_v0  ;;  %v681_v1 = vld [vmem:[%s977_s1 + $0x38] sm:$0xff]   ;;  %650 = vmatprep.subr.bf16.mxu1 %v716_v0  ;;  %v682_v2 = vld [vmem:[%s977_s1 + $0x30] sm:$0xff]   ;;  %v683_v3 = vld [vmem:[%s977_s1 + $0x28] sm:$0xff]   ;;  %vm538_vm11 = vcmask 293888  }
   0x2   :  { %229 = vmatpush1.bf16.msra.mxu0 %v681_v1  ;;  %664 = vmatpush1.bf16.msra.mxu1 %v681_v1  ;;  %v684_v4 = vld [vmem:[%s977_s1 + $0x20] sm:$0xff]   ;;  %v685_v5 = vld [vmem:[%s977_s1 + $0x18] sm:$0xff]   ;;  %v686_v8 = vld [vmem:[%s977_s1 + $0x10] sm:$0xff]  }
   0x3   :  { %230 = vmatprep.subr.bf16.mxu0 %v716_v0  ;;  %651 = vmatprep.subr.bf16.mxu1 %v716_v0  ;;  %v697_v6 = vld [vmem:[%s978_s0 + $0x4] ss:$8 sps:$4 sm:$0xff]   ;;  %v689_v11 = vld [vmem:[%s977_s1 + $0x68] ss:$0 sps:$4 sm:$0xff]   ;;  %v691_v14 = vld [vmem:[%s977_s1 + $0x58] sm:$0xff]  }
   0x4   :  { %614 = vmatprep.mubr.msk.bf16.mxu0 %vm202_vm0, %v697_v6  ;;  %v703_v7 = vld [vmem:[%s978_s0 + $0x44] ss:$8 sps:$4 sm:$0xff]   ;;  %v226_v12 = vsel %vm224_vm1, %v689_v11, 0  ;;  %v692_v15 = vld [vmem:[%s977_s1 + $0x50] sm:$0xff]   ;;  %v695_v18 = vld [vmem:[%s978_s0] ss:$8 sps:$4 sm:$0xff]  }
   0x5   :  { %618 = vmatprep.mubr.msk.bf16.mxu1 %vm202_vm0, %v703_v7  ;;  %v687_v9 = vld [vmem:[%s977_s1 + $0x8] sm:$0xff]   ;;  %v688_v10 = vld [vmem:[%s977_s1] sm:$0xff]   ;;  %v698_v20 = vld [vmem:[%s978_s0 + $0x14] ss:$8 sps:$4 sm:$0xff]  }
   0x6   :  { %231 = vmatpush1.bf16.msra.mxu0 %v682_v2  ;;  %665 = vmatpush1.bf16.msra.mxu1 %v682_v2  ;;  %v690_v13 = vld [vmem:[%s977_s1 + $0x60] sm:$0xff]   ;;  %v693_v16 = vld [vmem:[%s977_s1 + $0x48] sm:$0xff]   ;;  %v707_v21 = vld [vmem:[%s978_s0 + $0x54] ss:$8 sps:$4 sm:$0xff]  }
   0x7   :  { %232 = vmatprep.subr.bf16.mxu0 %v716_v0  ;;  %652 = vmatprep.subr.bf16.mxu1 %v716_v0  ;;  %v694_v17 = vld [vmem:[%s977_s1 + $0x40] sm:$0xff]   ;;  %v700_v22 = vld [vmem:[%s978_s0 + $0x10] ss:$8 sps:$4 sm:$0xff]   ;;  %v709_v28 = vld [vmem:[%s978_s0 + $0x34] ss:$8 sps:$4 sm:$0xff]  }
   0x8   :  { %v701_v19 = vld [vmem:[%s978_s0 + $0x40] ss:$8 sps:$4 sm:$0xff]   ;;  %v711_v23 = vld [vmem:[%s978_s0 + $0x50] ss:$8 sps:$4 sm:$0xff]   ;;  %v704_v24 = vld [vmem:[%s978_s0 + $0x24] ss:$8 sps:$4 sm:$0xff]  }
   0x9   :  { %v713_v25 = vld [vmem:[%s978_s0 + $0x64] ss:$8 sps:$4 sm:$0xff]   ;;  %v706_v26 = vld [vmem:[%s978_s0 + $0x20] ss:$8 sps:$4 sm:$0xff]   ;;  %v712_v29 = vld [vmem:[%s978_s0 + $0x30] ss:$8 sps:$4 sm:$0xff]  }
   0xa   :  { %233 = vmatpush1.bf16.msra.mxu0 %v683_v3  ;;  %666 = vmatpush1.bf16.msra.mxu1 %v683_v3  ;;  %v715_v27 = vld [vmem:[%s978_s0 + $0x60] ss:$8 sps:$4 sm:$0xff]  }
   0xb   :  { %234 = vmatprep.subr.bf16.mxu0 %v716_v0  ;;  %653 = vmatprep.subr.bf16.mxu1 %v716_v0  ;;  %v864_v30 = vld [vmem:[%s979_s2] ss:$0 sm:$0xff] }
   0xe   :  { %235 = vmatpush1.bf16.msra.mxu0 %v684_v4  ;;  %667 = vmatpush1.bf16.msra.mxu1 %v684_v4 }
   0xf   :  { %236 = vmatprep.subr.bf16.mxu0 %v716_v0  ;;  %654 = vmatprep.subr.bf16.mxu1 %v716_v0 }
  0x12   :  { %237 = vmatpush1.bf16.msra.mxu0 %v685_v5  ;;  %668 = vmatpush1.bf16.msra.mxu1 %v685_v5 }
  0x13   :  { %238 = vmatprep.subr.bf16.mxu0 %v716_v0  ;;  %655 = vmatprep.subr.bf16.mxu1 %v716_v0 }
  0x16   :  { %239 = vmatpush1.bf16.msra.mxu0 %v686_v8  ;;  %669 = vmatpush1.bf16.msra.mxu1 %v686_v8 }
  0x17   :  { %240 = vmatprep.subr.bf16.mxu0 %v716_v0  ;;  %656 = vmatprep.subr.bf16.mxu1 %v716_v0 }
  0x1a   :  { %241 = vmatpush1.bf16.msra.mxu0 %v687_v9  ;;  %670 = vmatpush1.bf16.msra.mxu1 %v687_v9 }
  0x1b   :  { %242 = vmatprep.subr.bf16.mxu0 %v716_v0  ;;  %657 = vmatprep.subr.bf16.mxu1 %v716_v0 }
  0x1e   :  { %243 = vmatpush1.bf16.msra.mxu0 %v688_v10  ;;  %671 = vmatpush1.bf16.msra.mxu1 %v688_v10 }
  0x1f   :  { %248 = vmatprep.subr.bf16.mxu0 %v716_v0  ;;  %658 = vmatprep.subr.bf16.mxu1 %v716_v0 }
  0x22   :  { %249 = vmatpush2.bf16.msra.mxu0 %v226_v12  ;;  %672 = vmatpush2.bf16.msra.mxu1 %v226_v12 }
  0x23   :  { %250 = vmatprep.subr.bf16.mxu0 %v716_v0  ;;  %659 = vmatprep.subr.bf16.mxu1 %v716_v0 }
  0x26   :  { %251 = vmatpush2.bf16.msra.mxu0 %v690_v13  ;;  %673 = vmatpush2.bf16.msra.mxu1 %v690_v13 }
  0x27   :  { %252 = vmatprep.subr.bf16.mxu0 %v716_v0  ;;  %660 = vmatprep.subr.bf16.mxu1 %v716_v0 }
  0x2a   :  { %253 = vmatpush2.bf16.msra.mxu0 %v691_v14  ;;  %674 = vmatpush2.bf16.msra.mxu1 %v691_v14 }
  0x2b   :  { %254 = vmatprep.subr.bf16.mxu0 %v716_v0  ;;  %661 = vmatprep.subr.bf16.mxu1 %v716_v0 }
  0x2e   :  { %255 = vmatpush2.bf16.msra.mxu0 %v692_v15  ;;  %675 = vmatpush2.bf16.msra.mxu1 %v692_v15 }
  0x2f   :  { %256 = vmatprep.subr.bf16.mxu0 %v716_v0  ;;  %662 = vmatprep.subr.bf16.mxu1 %v716_v0 }
  0x32   :  { %257 = vmatpush2.bf16.msra.mxu0 %v693_v16  ;;  %676 = vmatpush2.bf16.msra.mxu1 %v693_v16 }
  0x33   :  { %258 = vmatprep.subr.bf16.mxu0 %v716_v0  ;;  %663 = vmatprep.subr.bf16.mxu1 %v716_v0 }
  0x36   :  { %259 = vmatpush2.bf16.msra.mxu0 %v694_v17  ;;  %677 = vmatpush2.bf16.msra.mxu1 %v694_v17 }
  0x39   :  { %261 = vmatmul.mubr.bf16.vlgmr.msra.gmra.mxu0 %v695_v18  ;;  %293 = vmatmul.mubr.bf16.vlgmr.msra.gmra.mxu1 %v701_v19 }
  0x3a   :  { %615 = vmatprep.mubr.msk.bf16.mxu0 %vm202_vm0, %v698_v20  ;;  %619 = vmatprep.mubr.msk.bf16.mxu1 %vm202_vm0, %v707_v21 }
  0x41   :  { %269 = vmatmul.mubr.bf16.gmra.mxu0 %v700_v22  ;;  %301 = vmatmul.mubr.bf16.gmra.mxu1 %v711_v23 }
  0x42   :  { %616 = vmatprep.mubr.msk.bf16.mxu0 %vm202_vm0, %v704_v24  ;;  %620 = vmatprep.mubr.msk.bf16.mxu1 %vm202_vm0, %v713_v25 }
  0x49   :  { %277 = vmatmul.mubr.bf16.gmra.mxu0 %v706_v26  ;;  %309 = vmatmul.mubr.bf16.gmra.mxu1 %v715_v27 }
  0x4a   :  { %617 = vmatprep.mubr.msk.bf16.mxu0 %vm202_vm0, %v709_v28 }
  0x51   :  { %285 = vmatmul.mubr.bf16.gmra.mxu0 %v712_v29 }
  0xf9   :  { %v262_v31 = vpop.f32.mrf.mxu0  ;;  %v294_v32 = vpop.f32.mrf.mxu1 }
  0xfa   :  { %v324_v33 = vsub.f32 %v262_v31, %v864_v30  ;;  %v332_v34 = vsub.f32 %v294_v32, %v864_v30 }
  0xfb   :  { %v264_v35 = vpop.f32.mrf.mxu0  ;;  %v296_v36 = vpop.f32.mrf.mxu1 }
  0xfc   :  { %v338_v37 = vmax.f32 %v324_v33, 0.0  ;;  %v346_v38 = vmax.f32 %v332_v34, 0.0 }
  0xfd   :  { %v265_v39 = vpop.f32.mrf.mxu0  ;;  %v297_v40 = vpop.f32.mrf.mxu1 }
  0xfe   :  { %vm352_vm2 = vcmp.ge.f32.partialorder %v338_v37, 0.1  ;;  %v325_v41 = vsub.f32 %v265_v39, %v864_v30  ;;  %vm360_vm3 = vcmp.ge.f32.partialorder %v346_v38, 0.1  ;;  %v333_v42 = vsub.f32 %v297_v40, %v864_v30 }
  0xff   :  { %v870_v43 = vsel %vm352_vm2, %v338_v37, 0.0  ;;  %v267_v44 = vpop.f32.mrf.mxu0  ;;  %v872_v45 = vsel %vm360_vm3, %v346_v38, 0.0  ;;  %v299_v46 = vpop.f32.mrf.mxu1 }
 0x100   :  { %v636_v47 = vpack.c.bf16 %v870_v43, %v870_v43  ;;  %v339_v48 = vmax.f32 %v325_v41, 0.0  ;;  %v644_v49 = vpack.c.bf16 %v872_v45, %v872_v45  ;;  %v347_v51 = vmax.f32 %v333_v42, 0.0 }
 0x101   :  { %v270_v50 = vpop.f32.mrf.mxu0  ;;  %v302_v52 = vpop.f32.mrf.mxu1  ;;  %v539_v28 = vsel %vm538_vm11, %v870_v43, 0.0  ;;  %v452_v41 = vlaneseq }
 0x102   :  { %437 = vst.msk [vmem:[%s980_s3] sm:$0xf] %vm436_vm4, %v636_v47  ;;  %vm353_vm5 = vcmp.ge.f32.partialorder %v339_v48, 0.1  ;;  %v326_v53 = vsub.f32 %v270_v50, %v864_v30  ;;  %445 = vst.msk [vmem:[%s980_s3 + $0x20] sm:$0xf] %vm436_vm4, %v644_v49  ;;  %v334_v54 = vsub.f32 %v302_v52, %v864_v30 }
 0x103   :  { %v367_v55 = vsel %vm353_vm5, %v339_v48, 0.0  ;;  %v272_v56 = vpop.f32.mrf.mxu0  ;;  %vm361_vm6 = vcmp.ge.f32.partialorder %v347_v51, 0.1  ;;  %v304_v57 = vpop.f32.mrf.mxu1 }
 0x104   :  { %v637_v58 = vpack.c.bf16 %v367_v55, %v367_v55  ;;  %v340_v59 = vmax.f32 %v326_v53, 0.0  ;;  %v888_v60 = vsel %vm361_vm6, %v347_v51, 0.0  ;;  %v348_v63 = vmax.f32 %v334_v54, 0.0 }
 0x105   :  { %v273_v61 = vpop.f32.mrf.mxu0  ;;  %v645_v62 = vpack.c.bf16 %v888_v60, %v888_v60  ;;  %v305_v0 = vpop.f32.mrf.mxu1  ;;  %v540_v25 = vsel %vm538_vm11, %v367_v55, 0.0  ;;  %v453_v57 = vshrl.u32 %v452_v41, 7 }
 0x106   :  { %438 = vst.msk [vmem:[%s980_s3 + $0x4] sm:$0xf] %vm436_vm4, %v637_v58  ;;  %vm354_vm7 = vcmp.ge.f32.partialorder %v340_v59, 0.1  ;;  %v327_v1 = vsub.f32 %v273_v61, %v864_v30  ;;  %v335_v2 = vsub.f32 %v305_v0, %v864_v30  ;;  %vm362_vm8 = vcmp.ge.f32.partialorder %v348_v63, 0.1 }
 0x107   :  { %v368_v3 = vsel %vm354_vm7, %v340_v59, 0.0  ;;  %v275_v4 = vpop.f32.mrf.mxu0  ;;  %446 = vst.msk [vmem:[%s980_s3 + $0x24] sm:$0xf] %vm436_vm4, %v645_v62  ;;  %v307_v5 = vpop.f32.mrf.mxu1  ;;  %v902_v8 = vsel %vm362_vm8, %v348_v63, 0.0  ;;  %v541_v37 = vadd.f32 %v540_v25, %v539_v28 }
 0x108   :  { %v638_v6 = vpack.c.bf16 %v368_v3, %v368_v3  ;;  %v341_v7 = vmax.f32 %v327_v1, 0.0  ;;  %v646_v10 = vpack.c.bf16 %v902_v8, %v902_v8  ;;  %v349_v11 = vmax.f32 %v335_v2, 0.0 }
 0x109   :  { %v278_v9 = vpop.f32.mrf.mxu0  ;;  %v310_v12 = vpop.f32.mrf.mxu1  ;;  %v542_v33 = vsel %vm538_vm11, %v368_v3, 0.0 }
 0x10a   :  { %439 = vst.msk [vmem:[%s980_s3 + $0x8] sm:$0xf] %vm436_vm4, %v638_v6  ;;  %vm355_vm9 = vcmp.ge.f32.partialorder %v341_v7, 0.1  ;;  %v328_v13 = vsub.f32 %v278_v9, %v864_v30  ;;  %v336_v14 = vsub.f32 %v310_v12, %v864_v30  ;;  %447 = vst.msk [vmem:[%s980_s3 + $0x28] sm:$0xf] %vm436_vm4, %v646_v10  ;;  %v543_v44 = vadd.f32 %v542_v33, %v541_v37 }
 0x10b   :  { %v369_v15 = vsel %vm355_vm9, %v341_v7, 0.0  ;;  %v280_v16 = vpop.f32.mrf.mxu0  ;;  %vm363_vm10 = vcmp.ge.f32.partialorder %v349_v11, 0.1  ;;  %v312_v17 = vpop.f32.mrf.mxu1  ;;  %v554_v7 = vsel %vm538_vm11, %v872_v45, 0.0  ;;  %v556_v10 = vsel %vm538_vm11, %v888_v60, 0.0 }
 0x10c   :  { %v639_v18 = vpack.c.bf16 %v369_v15, %v369_v15  ;;  %v342_v19 = vmax.f32 %v328_v13, 0.0  ;;  %v916_v20 = vsel %vm363_vm10, %v349_v11, 0.0  ;;  %v350_v23 = vmax.f32 %v336_v14, 0.0 }
 0x10d   :  { %v281_v21 = vpop.f32.mrf.mxu0  ;;  %v647_v22 = vpack.c.bf16 %v916_v20, %v916_v20  ;;  %v313_v24 = vpop.f32.mrf.mxu1  ;;  %v544_v38 = vsel %vm538_vm11, %v369_v15, 0.0  ;;  %v558_v13 = vsel %vm538_vm11, %v902_v8, 0.0  ;;  %v560_v15 = vsel %vm538_vm11, %v916_v20, 0.0 }
 0x10e   :  { %440 = vst.msk [vmem:[%s980_s3 + $0xc] sm:$0xf] %vm436_vm4, %v639_v18  ;;  %vm356_vm12 = vcmp.ge.f32.partialorder %v342_v19, 0.1  ;;  %v329_v26 = vsub.f32 %v281_v21, %v864_v30  ;;  %v337_v27 = vsub.f32 %v313_v24, %v864_v30  ;;  %vm364_vm13 = vcmp.ge.f32.partialorder %v350_v23, 0.1 }
 0x10f   :  { %v370_v29 = vsel %vm356_vm12, %v342_v19, 0.0  ;;  %v283_v31 = vpop.f32.mrf.mxu0  ;;  %448 = vst.msk [vmem:[%s980_s3 + $0x2c] sm:$0xf] %vm436_vm4, %v647_v22  ;;  %v315_v32 = vpop.f32.mrf.mxu1  ;;  %v378_v40 = vsel %vm364_vm13, %v350_v23, 0.0  ;;  %v545_v53 = vadd.f32 %v544_v38, %v543_v44 }
 0x110   :  { %v640_v34 = vpack.c.bf16 %v370_v29, %v370_v29  ;;  %v343_v35 = vmax.f32 %v329_v26, 0.0  ;;  %v351_v36 = vmax.f32 %v337_v27, 0.0  ;;  %v648_v43 = vpack.c.bf16 %v378_v40, %v378_v40 }
 0x111   :  { %v286_v39 = vpop.f32.mrf.mxu0  ;;  %v546_v49 = vsel %vm538_vm11, %v370_v29, 0.0 }
 0x112   :  { %441 = vst.msk [vmem:[%s980_s3 + $0x10] sm:$0xf] %vm436_vm4, %v640_v34  ;;  %vm357_vm14 = vcmp.ge.f32.partialorder %v343_v35, 0.1  ;;  %v330_v42 = vsub.f32 %v286_v39, %v864_v30  ;;  %vm365_vm15 = vcmp.ge.f32.partialorder %v351_v36, 0.1  ;;  %v547_v58 = vadd.f32 %v546_v49, %v545_v53 }
 0x113   :  { %v371_v46 = vsel %vm357_vm14, %v343_v35, 0.0  ;;  %v288_v47 = vpop.f32.mrf.mxu0  ;;  %v379_v48 = vsel %vm365_vm15, %v351_v36, 0.0  ;;  %449 = vst.msk [vmem:[%s980_s3 + $0x30] sm:$0xf] %vm436_vm4, %v648_v43 }
 0x114   :  { %v641_v50 = vpack.c.bf16 %v371_v46, %v371_v46  ;;  %v344_v51 = vmax.f32 %v330_v42, 0.0  ;;  %v649_v52 = vpack.c.bf16 %v379_v48, %v379_v48  ;;  %v548_v55 = vsel %vm538_vm11, %v371_v46, 0.0 }
 0x115   :  { %v289_v54 = vpop.f32.mrf.mxu0  ;;  %v549_v1 = vadd.f32 %v548_v55, %v547_v58 }
 0x116   :  { %442 = vst.msk [vmem:[%s980_s3 + $0x14] sm:$0xf] %vm436_vm4, %v641_v50  ;;  %vm358_vm0 = vcmp.ge.f32.partialorder %v344_v51, 0.1  ;;  %v331_v56 = vsub.f32 %v289_v54, %v864_v30  ;;  %450 = vst.msk [vmem:[%s980_s3 + $0x34] sm:$0xf] %vm436_vm4, %v649_v52 }
 0x117   :  { %v372_v59 = vsel %vm358_vm0, %v344_v51, 0.0  ;;  %v291_v61 = vpop.f32.mrf.mxu0  ;;  %v465_v30 = vadd.s32 96, %v453_v57 }
 0x118   :  { %v642_v62 = vpack.c.bf16 %v372_v59, %v372_v59  ;;  %v550_v63 = vsel %vm538_vm11, %v372_v59, 0.0  ;;  %v345_v0 = vmax.f32 %v331_v56, 0.0 }
 0x119   :  { %v551_v2 = vadd.f32 %v550_v63, %v549_v1  ;;  %vm494_vm2 = vcmp.lt.s32.totalorder %v465_v30, 98 }
 0x11a   :  { %443 = vst.msk [vmem:[%s980_s3 + $0x18] sm:$0xf] %vm436_vm4, %v642_v62  ;;  %vm359_vm1 = vcmp.ge.f32.partialorder %v345_v0, 0.1  ;;  %v536_v11 = vsel %vm494_vm2, %v378_v40, 0.0 }
 0x11b   :  { %v373_v3 = vsel %vm359_vm1, %v345_v0, 0.0  ;;  %v562_v45 = vsel %vm538_vm11, %v536_v11, 0.0 }
 0x11c   :  { %v643_v4 = vpack.c.bf16 %v373_v3, %v373_v3  ;;  %v552_v5 = vsel %vm538_vm11, %v373_v3, 0.0 }
 0x11d   :  { %v553_v6 = vadd.f32 %v552_v5, %v551_v2 }
 0x11e   :  { %444 = vst.msk [vmem:[%s980_s3 + $0x1c] sm:$0xf] %vm436_vm4, %v643_v4 }
 0x11f   :  { %v555_v9 = vadd.f32 %v554_v7, %v553_v6 }
 0x121   :  { %v557_v12 = vadd.f32 %v556_v10, %v555_v9 }
 0x123   :  { %v559_v14 = vadd.f32 %v558_v13, %v557_v12 }
 0x125   :  { %v561_v16 = vadd.f32 %v560_v15, %v559_v14 }
 0x127   :  { %v563_v17 = vadd.f32 %v562_v45, %v561_v16 }
 0x129   :  { %566 = vadd.xlane.f32.xlu0 %v563_v17 }
 0x1b2   :  { %v567_v18 = vpop.xlane.xlu0 %566 }
 0x1b3   :  { %v568_v19 = vrot.slane %v567_v18, 4 }
 0x1b5   :  { %v569_v21 = vadd.f32 %v568_v19, %v567_v18 }
 0x1b7   :  { %v570_v22 = vrot.slane %v569_v21, 2 }
 0x1b9   :  { %v571_v23 = vadd.f32 %v570_v22, %v569_v21 }
 0x1bb   :  { %v572_v60 = vrot.slane %v571_v23, 1 }
 0x1bd   :  { %v573_v24 = vadd.f32 %v572_v60, %v571_v23 }
 0x1bf   :  { %678 = vpush %v573_v24 }
 0x1f0   :  { %s679_s3 = spop %678 }
 0x1f1   :  { %v575_v25 = vstv %s679_s3 }
 0x1f2   :  { %577 = vst [vmem:[%s981_s4] sm:$0xff] %v575_v25 }

// kernel: pilot_forward.9
= control target key start
LH: loop header
LB: loop body
LE: loop exit
PB: predicated region body
PF: predicated region fallthrough
CT: control target
= control target key end

     0   :  { %v646_v1 = vmov 0.0   ;;  %vm647_vm0 = vmmov 0   ;;  %vm248_vm1 = vcmask 1041408   ;;  %vm238_vm2 = vcmask 556032   ;;  %s820_s1 = inlined_call_operand.vmem [shape: bf16[324,64], index: 1, kind: input, shape index: {}]   ;;  %s821_s0 = inlined_call_operand.vmem [shape: bf16[48,324], index: 0, kind: input, shape index: {}]   ;;  %s822_s2 = inlined_call_operand.vmem [shape: f32[1,64], index: 2, kind: input, shape index: {}]   ;;  %s823_s3 = inlined_call_operand.vmem [shape: bf16[48,64], index: 3, kind: output, shape index: {0}]   ;;  %s824_s4 = inlined_call_operand.vmem [shape: f32[1,8,128], index: 4, kind: output, shape index: {1}]  }
   0x1   :  { %v613_v0 = vld [vmem:[%s820_s1 + $0x78] sm:$0xff]   ;;  %587 = vmatprep.subr.bf16.mxu1 %v646_v1  ;;  %597 = vmatprep.mubr.msk.bf16.mxu1 %vm647_vm0, %v646_v1  ;;  %v615_v3 = vld [vmem:[%s820_s1 + $0x70] sm:$0xff]   ;;  %v617_v5 = vld [vmem:[%s820_s1 + $0x68] sm:$0xff]   ;;  %vm421_vm4 = vcmask 519168   ;;  %vm467_vm7 = vcmask 523264  }
   0x2   :  { %v614_v2 = vld [vmem:[%s820_s1 + $0x38] sm:$0xff]   ;;  %545 = vmatprep.subr.bf16.mxu0 %v613_v0  ;;  %v616_v4 = vld [vmem:[%s820_s1 + $0x30] sm:$0xff]   ;;  %v618_v6 = vld [vmem:[%s820_s1 + $0x28] sm:$0xff]  }
   0x3   :  { %546 = vmatpush3.bf16.msra.mxu0 %v614_v2  ;;  %v619_v7 = vld [vmem:[%s820_s1 + $0xa0] ss:$0 sps:$4 sm:$0x33]   ;;  %v622_v10 = vld [vmem:[%s820_s1 + $0x98] sm:$0xff]   ;;  %v625_v13 = vld [vmem:[%s820_s1 + $0x90] sm:$0xff]  }
   0x4   :  { %547 = vmatprep.subr.bf16.mxu0 %v615_v3  ;;  %v250_v8 = vsel %vm248_vm1, %v619_v7, 0  ;;  %v620_v9 = vld [vmem:[%s820_s1 + $0x60] sm:$0xff]   ;;  %v623_v12 = vld [vmem:[%s820_s1 + $0x58] sm:$0xff]   ;;  %v626_v15 = vld [vmem:[%s820_s1 + $0x50] sm:$0xff]  }
   0x5   :  { %588 = vmatpush3.bf16.msra.mxu1 %v250_v8  ;;  %v621_v11 = vld [vmem:[%s820_s1 + $0x20] sm:$0xff]   ;;  %v624_v14 = vld [vmem:[%s820_s1 + $0x18] sm:$0xff]   ;;  %v628_v16 = vld [vmem:[%s820_s1 + $0x88] sm:$0xff]  }
   0x6   :  { %589 = vmatprep.subr.bf16.mxu1 %v646_v1  ;;  %v627_v17 = vld [vmem:[%s820_s1 + $0x10] sm:$0xff]   ;;  %v629_v18 = vld [vmem:[%s820_s1 + $0x48] sm:$0xff]   ;;  %v631_v19 = vld [vmem:[%s820_s1 + $0x80] sm:$0xff]  }
   0x7   :  { %548 = vmatpush3.bf16.msra.mxu0 %v616_v4  ;;  %v630_v20 = vld [vmem:[%s820_s1 + $0x8] sm:$0xff]   ;;  %v637_v21 = vld [vmem:[%s821_s0 + $0x4] ss:$12 sps:$4 sm:$0xff]   ;;  %v643_v29 = vld [vmem:[%s821_s0 + $0x34] ss:$12 sps:$4 sm:$0xff]  }
   0x8   :  { %549 = vmatprep.subr.bf16.mxu0 %v617_v5  ;;  %v632_v22 = vld [vmem:[%s820_s1 + $0x40] sm:$0xff]   ;;  %v634_v23 = vld [vmem:[%s821_s0 + $0x8] ss:$12 sps:$4 sm:$0xff]   ;;  %284 = vmatprep.mubr.bf16.mxu0 %v637_v21  ;;  %v645_v31 = vld [vmem:[%s821_s0 + $0x30] ss:$12 sps:$4 sm:$0xff]  }
   0x9   :  { %590 = vmatpush3.bf16.msra.mxu1 %v622_v10  ;;  %v633_v24 = vld [vmem:[%s820_s1] sm:$0xff]   ;;  %v639_v26 = vld [vmem:[%s821_s0 + $0x1c] ss:$12 sps:$4 sm:$0xff]  }
   0xa   :  { %591 = vmatprep.subr.bf16.mxu1 %v646_v1  ;;  %v635_v25 = vld [vmem:[%s821_s0] ss:$12 sps:$4 sm:$0xff]   ;;  %v641_v28 = vld [vmem:[%s821_s0 + $0x18] ss:$12 sps:$4 sm:$0xff]  }
   0xb   :  { %550 = vmatpush3.bf16.msra.mxu0 %v618_v6  ;;  %v638_v27 = vld [vmem:[%s821_s0 + $0x20] ss:$12 sps:$4 sm:$0xff]   ;;  %v642_v30 = vld [vmem:[%s821_s0 + $0x38] ss:$12 sps:$4 sm:$0xff]  }
   0xc   :  { %551 = vmatprep.subr.bf16.mxu0 %v620_v9  ;;  %v780_v40 = vld [vmem:[%s822_s2] ss:$0 sm:$0xff] }
   0xd   :  { %592 = vmatpush3.bf16.msra.mxu1 %v625_v13 }
   0xe   :  { %593 = vmatprep.subr.bf16.mxu1 %v646_v1 }
   0xf   :  { %552 = vmatpush3.bf16.msra.mxu0 %v621_v11 }
  0x10   :  { %553 = vmatprep.subr.bf16.mxu0 %v623_v12 }
  0x11   :  { %594 = vmatpush3.bf16.msra.mxu1 %v628_v16 }
  0x12   :  { %595 = vmatprep.subr.bf16.mxu1 %v646_v1 }
  0x13   :  { %554 = vmatpush3.bf16.msra.mxu0 %v624_v14 }
  0x14   :  { %555 = vmatprep.subr.bf16.mxu0 %v626_v15 }
  0x15   :  { %596 = vmatpush3.bf16.msra.mxu1 %v631_v19 }
  0x17   :  { %556 = vmatpush3.bf16.msra.mxu0 %v627_v17 }
  0x18   :  { %557 = vmatprep.subr.bf16.mxu0 %v629_v18  ;;  %598 = vmatmul.mubr.msk.bf16.vlgmr.msra.gmra.mxu1 %vm238_vm2, %v634_v23 }
  0x19   :  { %601 = vmatprep.mubr.msk.bf16.mxu1 %vm647_vm0, %v646_v1 }
  0x1b   :  { %558 = vmatpush3.bf16.msra.mxu0 %v630_v20 }
  0x1c   :  { %559 = vmatprep.subr.bf16.mxu0 %v632_v22 }
  0x1f   :  { %560 = vmatpush3.bf16.msra.mxu0 %v633_v24 }
  0x20   :  { %602 = vmatmul.mubr.msk.bf16.gmra.mxu1 %vm238_vm2, %v638_v27 }
  0x21   :  { %605 = vmatprep.mubr.msk.bf16.mxu1 %vm647_vm0, %v646_v1 }
  0x22   :  { %285 = vmatmul.mubr.bf16.vlgmr.msra.gmra.mxu0 %v635_v25 }
  0x23   :  { %292 = vmatprep.mubr.bf16.mxu0 %v639_v26 }
  0x28   :  { %606 = vmatmul.mubr.msk.bf16.gmra.mxu1 %vm238_vm2, %v642_v30 }
  0x2a   :  { %293 = vmatmul.mubr.bf16.gmra.mxu0 %v641_v28 }
  0x2b   :  { %300 = vmatprep.mubr.bf16.mxu0 %v643_v29 }
  0x32   :  { %301 = vmatmul.mubr.bf16.gmra.mxu0 %v645_v31 }
  0xd8   :  { %v343_v32 = vpop.f32.mrf.mxu1 }
  0xda   :  { %v599_v33 = vpop.f32.mrf.mxu1 }
  0xdc   :  { %v346_v34 = vpop.f32.mrf.mxu1 }
  0xde   :  { %v600_v36 = vpop.f32.mrf.mxu1 }
  0xe0   :  { %v351_v38 = vpop.f32.mrf.mxu1 }
  0xe2   :  { %v561_v35 = vpop.f32.mrf.mxu0  ;;  %v603_v42 = vpop.f32.mrf.mxu1 }
  0xe4   :  { %v562_v37 = vpop.f32.mrf.mxu0  ;;  %v354_v45 = vpop.f32.mrf.mxu1 }
  0xe5   :  { %v563_v39 = vadd.f32 %v562_v37, %v561_v35 }
  0xe6   :  { %v564_v41 = vpop.f32.mrf.mxu0  ;;  %v604_v49 = vpop.f32.mrf.mxu1 }
  0xe7   :  { %v344_v43 = vadd.f32 %v563_v39, %v343_v32 }
  0xe8   :  { %v565_v44 = vpop.f32.mrf.mxu0  ;;  %v359_v53 = vpop.f32.mrf.mxu1 }
  0xe9   :  { %v373_v46 = vsub.f32 %v344_v43, %v780_v40  ;;  %v566_v47 = vadd.f32 %v565_v44, %v564_v41 }
  0xea   :  { %v567_v48 = vpop.f32.mrf.mxu0  ;;  %v607_v58 = vpop.f32.mrf.mxu1 }
  0xeb   :  { %v379_v50 = vmax.f32 %v373_v46, 0.0  ;;  %v347_v51 = vadd.f32 %v566_v47, %v346_v34 }
  0xec   :  { %v568_v52 = vpop.f32.mrf.mxu0  ;;  %v362_v63 = vpop.f32.mrf.mxu1 }
  0xed   :  { %vm385_vm3 = vcmp.ge.f32.partialorder %v379_v50, 0.1  ;;  %v374_v54 = vsub.f32 %v347_v51, %v780_v40  ;;  %v569_v55 = vadd.f32 %v568_v52, %v567_v48 }
  0xee   :  { %v391_v56 = vsel %vm385_vm3, %v379_v50, 0.0  ;;  %v570_v57 = vpop.f32.mrf.mxu0  ;;  %v608_v4 = vpop.f32.mrf.mxu1 }
  0xef   :  { %v539_v59 = vpack.c.bf16 %v391_v56, %v391_v56  ;;  %v380_v60 = vmax.f32 %v374_v54, 0.0  ;;  %v352_v61 = vadd.f32 %v569_v55, %v351_v38  ;;  %v468_v18 = vsel %vm467_vm7, %v391_v56, 0.0 }
  0xf0   :  { %v571_v62 = vpop.f32.mrf.mxu0 }
  0xf1   :  { %422 = vst.msk [vmem:[%s823_s3] sm:$0xf] %vm421_vm4, %v539_v59  ;;  %vm386_vm5 = vcmp.ge.f32.partialorder %v380_v60, 0.1  ;;  %v375_v0 = vsub.f32 %v352_v61, %v780_v40  ;;  %v572_v1 = vadd.f32 %v571_v62, %v570_v57 }
  0xf2   :  { %v392_v2 = vsel %vm386_vm5, %v380_v60, 0.0  ;;  %v573_v3 = vpop.f32.mrf.mxu0 }
  0xf3   :  { %v540_v5 = vpack.c.bf16 %v392_v2, %v392_v2  ;;  %v381_v6 = vmax.f32 %v375_v0, 0.0  ;;  %v355_v7 = vadd.f32 %v572_v1, %v354_v45  ;;  %v469_v16 = vsel %vm467_vm7, %v392_v2, 0.0 }
  0xf4   :  { %v574_v8 = vpop.f32.mrf.mxu0  ;;  %v470_v23 = vadd.f32 %v469_v16, %v468_v18 }
  0xf5   :  { %423 = vst.msk [vmem:[%s823_s3 + $0x4] sm:$0xf] %vm421_vm4, %v540_v5  ;;  %v376_v9 = vsub.f32 %v355_v7, %v780_v40  ;;  %v575_v10 = vadd.f32 %v574_v8, %v573_v3  ;;  %vm387_vm6 = vcmp.ge.f32.partialorder %v381_v6, 0.1 }
  0xf6   :  { %v576_v11 = vpop.f32.mrf.mxu0  ;;  %v393_v12 = vsel %vm387_vm6, %v381_v6, 0.0 }
  0xf7   :  { %v382_v13 = vmax.f32 %v376_v9, 0.0  ;;  %v360_v14 = vadd.f32 %v575_v10, %v359_v53  ;;  %v541_v15 = vpack.c.bf16 %v393_v12, %v393_v12  ;;  %v471_v21 = vsel %vm467_vm7, %v393_v12, 0.0 }
  0xf8   :  { %v577_v17 = vpop.f32.mrf.mxu0  ;;  %v472_v28 = vadd.f32 %v471_v21, %v470_v23 }
  0xf9   :  { %v578_v19 = vadd.f32 %v577_v17, %v576_v11  ;;  %v377_v20 = vsub.f32 %v360_v14, %v780_v40  ;;  %vm388_vm8 = vcmp.ge.f32.partialorder %v382_v13, 0.1  ;;  %424 = vst.msk [vmem:[%s823_s3 + $0x8] sm:$0xf] %vm421_vm4, %v541_v15 }
  0xfa   :  { %v394_v22 = vsel %vm388_vm8, %v382_v13, 0.0 }
  0xfb   :  { %v363_v24 = vadd.f32 %v578_v19, %v362_v63  ;;  %v383_v25 = vmax.f32 %v377_v20, 0.0  ;;  %v542_v26 = vpack.c.bf16 %v394_v22, %v394_v22  ;;  %v473_v27 = vsel %vm467_vm7, %v394_v22, 0.0 }
  0xfc   :  { %v474_v31 = vadd.f32 %v473_v27, %v472_v28 }
  0xfd   :  { %v378_v29 = vsub.f32 %v363_v24, %v780_v40  ;;  %vm389_vm9 = vcmp.ge.f32.partialorder %v383_v25, 0.1  ;;  %425 = vst.msk [vmem:[%s823_s3 + $0xc] sm:$0xf] %vm421_vm4, %v542_v26 }
  0xfe   :  { %v395_v30 = vsel %vm389_vm9, %v383_v25, 0.0 }
  0xff   :  { %v384_v32 = vmax.f32 %v378_v29, 0.0  ;;  %v543_v33 = vpack.c.bf16 %v395_v30, %v395_v30  ;;  %v475_v34 = vsel %vm467_vm7, %v395_v30, 0.0 }
 0x100   :  { %v476_v35 = vadd.f32 %v475_v34, %v474_v31 }
 0x101   :  { %vm390_vm10 = vcmp.ge.f32.partialorder %v384_v32, 0.1  ;;  %426 = vst.msk [vmem:[%s823_s3 + $0x10] sm:$0xf] %vm421_vm4, %v543_v33 }
 0x102   :  { %v396_v36 = vsel %vm390_vm10, %v384_v32, 0.0  ;;  %479 = vadd.xlane.f32.xlu0 %v476_v35 }
 0x103   :  { %v544_v37 = vpack.c.bf16 %v396_v36, %v396_v36 }
 0x105   :  { %427 = vst.msk [vmem:[%s823_s3 + $0x14] sm:$0xf] %vm421_vm4, %v544_v37 }
 0x18b   :  { %v480_v38 = vpop.xlane.xlu0 %479 }
 0x18c   :  { %v481_v39 = vrot.slane %v480_v38, 4 }
 0x18e   :  { %v482_v40 = vadd.f32 %v481_v39, %v480_v38 }
 0x190   :  { %v483_v41 = vrot.slane %v482_v40, 2 }
 0x192   :  { %v484_v42 = vadd.f32 %v483_v41, %v482_v40 }
 0x194   :  { %v485_v43 = vrot.slane %v484_v42, 1 }
 0x196   :  { %v486_v44 = vadd.f32 %v485_v43, %v484_v42 }
 0x198   :  { %609 = vpush %v486_v44 }
 0x1c9   :  { %s610_s8 = spop %609 }
 0x1ca   :  { %v488_v45 = vstv %s610_s8 }
 0x1cb   :  { %490 = vst [vmem:[%s824_s4] sm:$0xff] %v488_v45 }

// kernel: pilot_forward.10
= control target key start
LH: loop header
LB: loop body
LE: loop exit
PB: predicated region body
PF: predicated region fallthrough
CT: control target
= control target key end

     0   :  { %v682_v34 = vmov 0.0   ;;  %vm683_vm0 = vmmov 0   ;;  %vm336_vm1 = vcmask 523264   ;;  %v490_v52 = vlaneseq  ;;  %s847_s1 = inlined_call_operand.vmem [shape: bf16[576,64], index: 1, kind: input, shape index: {}]   ;;  %s848_s0 = inlined_call_operand.vmem [shape: bf16[16,576], index: 0, kind: input, shape index: {}]   ;;  %s849_s2 = inlined_call_operand.vmem [shape: f32[1,64], index: 2, kind: input, shape index: {}]   ;;  %s850_s3 = inlined_call_operand.vmem [shape: bf16[16,64], index: 3, kind: output, shape index: {0}]   ;;  %s851_s4 = inlined_call_operand.vmem [shape: f32[1,8,128], index: 4, kind: output, shape index: {1}]  }
   0x1   :  { %v639_v0 = vld [vmem:[%s847_s1 + $0x78] sm:$0xff]   ;;  %v643_v4 = vld [vmem:[%s847_s1 + $0x70] sm:$0xff]   ;;  %v647_v8 = vld [vmem:[%s847_s1 + $0x68] sm:$0xff]   ;;  %vm486_vm3 = vcmask 519168  }
   0x2   :  { %v640_v1 = vld [vmem:[%s847_s1 + $0xf8] sm:$0xff]   ;;  %574 = vmatprep.subr.bf16.mxu0 %v639_v0  ;;  %v644_v5 = vld [vmem:[%s847_s1 + $0xf0] sm:$0xff]   ;;  %v648_v9 = vld [vmem:[%s847_s1 + $0xe8] sm:$0xff]   ;;  %v491_v60 = vshrl.u32 %v490_v52, 7 }
   0x3   :  { %v641_v2 = vld [vmem:[%s847_s1 + $0x38] sm:$0xff]   ;;  %596 = vmatprep.subr.bf16.mxu1 %v640_v1  ;;  %v645_v6 = vld [vmem:[%s847_s1 + $0x30] sm:$0xff]   ;;  %v649_v10 = vld [vmem:[%s847_s1 + $0x28] sm:$0xff]  }
   0x4   :  { %v642_v3 = vld [vmem:[%s847_s1 + $0xb8] sm:$0xff]   ;;  %575 = vmatpush3.bf16.msra.mxu0 %v641_v2  ;;  %v646_v7 = vld [vmem:[%s847_s1 + $0xb0] sm:$0xff]   ;;  %v650_v11 = vld [vmem:[%s847_s1 + $0xa8] sm:$0xff]  }
   0x5   :  { %597 = vmatpush3.bf16.msra.mxu1 %v642_v3  ;;  %576 = vmatprep.subr.bf16.mxu0 %v643_v4  ;;  %v651_v12 = vld [vmem:[%s847_s1 + $0x60] sm:$0xff]   ;;  %v655_v16 = vld [vmem:[%s847_s1 + $0x58] sm:$0xff]   ;;  %v659_v20 = vld [vmem:[%s847_s1 + $0x50] sm:$0xff]   ;;  %v492_v3 = vadd.s32 8, %v491_v60 }
   0x6   :  { %598 = vmatprep.subr.bf16.mxu1 %v644_v5  ;;  %v652_v13 = vld [vmem:[%s847_s1 + $0xe0] sm:$0xff]   ;;  %v656_v17 = vld [vmem:[%s847_s1 + $0xd8] sm:$0xff]   ;;  %v660_v21 = vld [vmem:[%s847_s1 + $0xd0] sm:$0xff]  }
   0x7   :  { %v653_v14 = vld [vmem:[%s847_s1 + $0x20] sm:$0xff]   ;;  %v657_v18 = vld [vmem:[%s847_s1 + $0x18] sm:$0xff]   ;;  %v661_v22 = vld [vmem:[%s847_s1 + $0x10] sm:$0xff]   ;;  %vm497_vm4 = vcmp.lt.s32.totalorder %v492_v3, 12 }
   0x8   :  { %577 = vmatpush3.bf16.msra.mxu0 %v645_v6  ;;  %v654_v15 = vld [vmem:[%s847_s1 + $0xa0] sm:$0xff]   ;;  %v658_v19 = vld [vmem:[%s847_s1 + $0x98] sm:$0xff]   ;;  %v662_v23 = vld [vmem:[%s847_s1 + $0x90] sm:$0xff]  }
   0x9   :  { %599 = vmatpush3.bf16.msra.mxu1 %v646_v7  ;;  %578 = vmatprep.subr.bf16.mxu0 %v647_v8  ;;  %v663_v24 = vld [vmem:[%s847_s1 + $0x48] sm:$0xff]   ;;  %v667_v28 = vld [vmem:[%s847_s1 + $0x40] sm:$0xff]   ;;  %v677_v37 = vld [vmem:[%s847_s1 + $0x118] sm:$0xff]  }
   0xa   :  { %600 = vmatprep.subr.bf16.mxu1 %v648_v9  ;;  %v664_v25 = vld [vmem:[%s847_s1 + $0xc8] sm:$0xff]   ;;  %v668_v29 = vld [vmem:[%s847_s1 + $0xc0] sm:$0xff]   ;;  %v678_v38 = vld [vmem:[%s847_s1 + $0x110] sm:$0xff]  }
   0xb   :  { %v665_v26 = vld [vmem:[%s847_s1 + $0x8] sm:$0xff]   ;;  %v669_v30 = vld [vmem:[%s847_s1] sm:$0xff]  }
   0xc   :  { %579 = vmatpush3.bf16.msra.mxu0 %v649_v10  ;;  %v666_v27 = vld [vmem:[%s847_s1 + $0x88] sm:$0xff]   ;;  %v670_v31 = vld [vmem:[%s847_s1 + $0x80] sm:$0xff]  }
   0xd   :  { %601 = vmatpush3.bf16.msra.mxu1 %v650_v11  ;;  %580 = vmatprep.subr.bf16.mxu0 %v651_v12  ;;  %v671_v32 = vld [vmem:[%s848_s0] ss:$20 sps:$4 sm:$0xff]   ;;  %v673_v33 = vld [vmem:[%s848_s0 + $0x4] ss:$20 sps:$4 sm:$0xff]   ;;  %v674_v35 = vld [vmem:[%s848_s0 + $0x8] ss:$20 sps:$4 sm:$0xff]  }
   0xe   :  { %602 = vmatprep.subr.bf16.mxu1 %v652_v13  ;;  %v676_v36 = vld [vmem:[%s848_s0 + $0xc] ss:$20 sps:$4 sm:$0xff]   ;;  %372 = vmatprep.mubr.bf16.mxu0 %v673_v33  ;;  %v681_v41 = vld [vmem:[%s848_s0 + $0x10] ss:$20 sps:$4 sm:$0xff]  }
   0xf   :  { %413 = vmatprep.mubr.bf16.mxu1 %v676_v36  ;;  %v679_v39 = vld [vmem:[%s847_s1 + $0x108] sm:$0xff]   ;;  %v680_v40 = vld [vmem:[%s847_s1 + $0x100] sm:$0xff]  }
  0x10   :  { %581 = vmatpush3.bf16.msra.mxu0 %v653_v14  ;;  %v569_v57 = vld [vmem:[%s849_s2] ss:$0 sm:$0xff] }
  0x11   :  { %603 = vmatpush3.bf16.msra.mxu1 %v654_v15  ;;  %582 = vmatprep.subr.bf16.mxu0 %v655_v16 }
  0x12   :  { %604 = vmatprep.subr.bf16.mxu1 %v656_v17 }
  0x14   :  { %583 = vmatpush3.bf16.msra.mxu0 %v657_v18 }
  0x15   :  { %605 = vmatpush3.bf16.msra.mxu1 %v658_v19  ;;  %584 = vmatprep.subr.bf16.mxu0 %v659_v20 }
  0x16   :  { %606 = vmatprep.subr.bf16.mxu1 %v660_v21 }
  0x18   :  { %585 = vmatpush3.bf16.msra.mxu0 %v661_v22 }
  0x19   :  { %607 = vmatpush3.bf16.msra.mxu1 %v662_v23  ;;  %586 = vmatprep.subr.bf16.mxu0 %v663_v24 }
  0x1a   :  { %608 = vmatprep.subr.bf16.mxu1 %v664_v25 }
  0x1c   :  { %587 = vmatpush3.bf16.msra.mxu0 %v665_v26 }
  0x1d   :  { %609 = vmatpush3.bf16.msra.mxu1 %v666_v27  ;;  %588 = vmatprep.subr.bf16.mxu0 %v667_v28 }
  0x1e   :  { %610 = vmatprep.subr.bf16.mxu1 %v668_v29 }
  0x20   :  { %589 = vmatpush3.bf16.msra.mxu0 %v669_v30 }
  0x21   :  { %611 = vmatpush3.bf16.msra.mxu1 %v670_v31  ;;  %623 = vmatprep.subr.bf16.mxu0 %v682_v34 }
  0x23   :  { %373 = vmatmul.mubr.bf16.vlgmr.msra.gmra.mxu0 %v671_v32 }
  0x24   :  { %414 = vmatmul.mubr.bf16.vlgmr.msra.gmra.mxu1 %v674_v35  ;;  %624 = vmatpush3.bf16.msra.mxu0 %v677_v37 }
  0x25   :  { %625 = vmatprep.subr.bf16.mxu0 %v682_v34  ;;  %631 = vmatprep.mubr.msk.bf16.mxu0 %vm683_vm0, %v682_v34 }
  0x28   :  { %626 = vmatpush3.bf16.msra.mxu0 %v678_v38 }
  0x29   :  { %627 = vmatprep.subr.bf16.mxu0 %v682_v34 }
  0x2c   :  { %628 = vmatpush3.bf16.msra.mxu0 %v679_v39 }
  0x2d   :  { %629 = vmatprep.subr.bf16.mxu0 %v682_v34 }
  0x30   :  { %630 = vmatpush3.bf16.msra.mxu0 %v680_v40 }
  0x33   :  { %632 = vmatmul.mubr.msk.bf16.vlgmr.msra.gmra.mxu0 %vm336_vm1, %v681_v41 }
  0xe3   :  { %v590_v42 = vpop.f32.mrf.mxu0 }
  0xe4   :  { %v612_v43 = vpop.f32.mrf.mxu1 }
  0xe5   :  { %v591_v44 = vpop.f32.mrf.mxu0 }
  0xe6   :  { %v613_v45 = vpop.f32.mrf.mxu1  ;;  %v592_v48 = vadd.f32 %v591_v44, %v590_v42 }
  0xe7   :  { %v593_v46 = vpop.f32.mrf.mxu0  ;;  %v614_v49 = vadd.f32 %v613_v45, %v612_v43 }
  0xe8   :  { %v615_v47 = vpop.f32.mrf.mxu1 }
  0xe9   :  { %v594_v50 = vpop.f32.mrf.mxu0  ;;  %v416_v55 = vadd.f32 %v614_v49, %v592_v48 }
  0xea   :  { %v616_v51 = vpop.f32.mrf.mxu1  ;;  %v595_v53 = vadd.f32 %v594_v50, %v593_v46 }
  0xeb   :  { %v617_v54 = vadd.f32 %v616_v51, %v615_v47 }
  0xed   :  { %v419_v62 = vadd.f32 %v617_v54, %v595_v53 }
  0xf3   :  { %v456_v56 = vpop.f32.mrf.mxu0 }
  0xf4   :  { %v457_v58 = vadd.f32 %v456_v56, %v416_v55 }
  0xf5   :  { %v633_v59 = vpop.f32.mrf.mxu0 }
  0xf6   :  { %v470_v61 = vsub.f32 %v457_v58, %v569_v57 }
  0xf7   :  { %v459_v63 = vpop.f32.mrf.mxu0 }
  0xf8   :  { %v472_v0 = vmax.f32 %v470_v61, 0.0  ;;  %v460_v1 = vadd.f32 %v459_v63, %v419_v62 }
  0xf9   :  { %v634_v2 = vpop.f32.mrf.mxu0 }
  0xfa   :  { %v471_v4 = vsub.f32 %v460_v1, %v569_v57  ;;  %vm474_vm2 = vcmp.ge.f32.partialorder %v472_v0, 0.1 }
  0xfb   :  { %v476_v5 = vsel %vm474_vm2, %v472_v0, 0.0 }
  0xfc   :  { %v473_v6 = vmax.f32 %v471_v4, 0.0  ;;  %v572_v7 = vpack.c.bf16 %v476_v5, %v476_v5  ;;  %v504_v11 = vsel %vm336_vm1, %v476_v5, 0.0 }
  0xfe   :  { %vm475_vm5 = vcmp.ge.f32.partialorder %v473_v6, 0.1  ;;  %487 = vst.msk [vmem:[%s850_s3] sm:$0xf] %vm486_vm3, %v572_v7 }
  0xff   :  { %v477_v8 = vsel %vm475_vm5, %v473_v6, 0.0 }
 0x100   :  { %v573_v9 = vpack.c.bf16 %v477_v8, %v477_v8  ;;  %v503_v10 = vsel %vm497_vm4, %v477_v8, 0.0 }
 0x101   :  { %v505_v12 = vsel %vm336_vm1, %v503_v10, 0.0 }
 0x102   :  { %488 = vst.msk [vmem:[%s850_s3 + $0x4] sm:$0xf] %vm486_vm3, %v573_v9  ;;  %v506_v13 = vadd.f32 %v505_v12, %v504_v11 }
 0x104   :  { %507 = vadd.xlane.f32.xlu0 %v506_v13 }
 0x18d   :  { %v508_v14 = vpop.xlane.xlu0 %507 }
 0x18e   :  { %v509_v15 = vrot.slane %v508_v14, 4 }
 0x190   :  { %v510_v16 = vadd.f32 %v509_v15, %v508_v14 }
 0x192   :  { %v511_v17 = vrot.slane %v510_v16, 2 }
 0x194   :  { %v512_v18 = vadd.f32 %v511_v17, %v510_v16 }
 0x196   :  { %v513_v19 = vrot.slane %v512_v18, 1 }
 0x198   :  { %v514_v20 = vadd.f32 %v513_v19, %v512_v18 }
 0x19a   :  { %635 = vpush %v514_v20 }
 0x1cb   :  { %s636_s22 = spop %635 }
 0x1cc   :  { %v516_v21 = vstv %s636_s22 }
 0x1cd   :  { %518 = vst [vmem:[%s851_s4] sm:$0xff] %v516_v21 }

// kernel: pilot_forward.11
= control target key start
LH: loop header
LB: loop body
LE: loop exit
PB: predicated region body
PF: predicated region fallthrough
CT: control target
= control target key end

     0   :  { %v800_v0 = vmov 0.0   ;;  %vm801_vm0 = vmmov 0   ;;  %vm393_vm1 = vcmask 1041408   ;;  %vm313_vm2 = vcmask 818176   ;;  %s1009_s1 = inlined_call_operand.vmem [shape: bf16[384,100], index: 1, kind: input, shape index: {}]   ;;  %s1010_s0 = inlined_call_operand.vmem [shape: bf16[8,384], index: 0, kind: input, shape index: {}]   ;;  %s1011_s2 = inlined_call_operand.vmem [shape: bf16[100,50], index: 2, kind: input, shape index: {}]   ;;  %s1012_s3 = inlined_call_operand.vmem [shape: bf16[50,10], index: 3, kind: input, shape index: {}]   ;;  %s1013_s4 = inlined_call_operand.vmem [shape: bf16[1,10], index: 4, kind: input, shape index: {}]   ;;  %s1014_s5 = inlined_call_operand.vmem [shape: f32[8,1], index: 5, kind: output, shape index: {0}]   ;;  %s1015_s6 = inlined_call_operand.vmem [shape: f32[8,128], index: 6, kind: output, shape index: {1}]  }
   0x1   :  { %702 = vmatprep.subr.bf16.mxu1 %v800_v0  ;;  %v762_v1 = vld [vmem:[%s1009_s1 + $0x78] sm:$0xff]   ;;  %718 = vmatprep.mubr.msk.bf16.mxu1 %vm801_vm0, %v800_v0  ;;  %v765_v4 = vld [vmem:[%s1009_s1 + $0x70] sm:$0xff]   ;;  %v768_v7 = vld [vmem:[%s1009_s1 + $0x68] sm:$0xff]   ;;  %v23_v51 = vlaneseq  ;;  %vm493_vm5 = vcmask 1040384   ;;  %vm437_vm6 = vcmask 408576   ;;  %vm537_vm8 = vcmask 80896  }
   0x2   :  { %v763_v2 = vld [vmem:[%s1009_s1 + $0xb8] sm:$0xff]   ;;  %658 = vmatprep.subr.bf16.mxu0 %v762_v1  ;;  %v766_v5 = vld [vmem:[%s1009_s1 + $0xb0] sm:$0xff]   ;;  %v769_v8 = vld [vmem:[%s1009_s1 + $0xa8] sm:$0xff]   ;;  %vm581_vm10 = vcmask 7168  }
   0x3   :  { %v764_v3 = vld [vmem:[%s1009_s1 + $0x38] sm:$0xff]   ;;  %703 = vmatpush3.bf16.msra.mxu1 %v763_v2  ;;  %v767_v6 = vld [vmem:[%s1009_s1 + $0x30] sm:$0xff]   ;;  %v770_v9 = vld [vmem:[%s1009_s1 + $0x28] sm:$0xff]   ;;  %v959_v54 = vshrl.u32 %v23_v51, 7 }
   0x4   :  { %659 = vmatpush3.bf16.msra.mxu0 %v764_v3  ;;  %704 = vmatprep.subr.bf16.mxu1 %v800_v0  ;;  %v771_v10 = vld [vmem:[%s1009_s1 + $0x60] sm:$0xff]   ;;  %v774_v13 = vld [vmem:[%s1009_s1 + $0x58] sm:$0xff]   ;;  %v777_v16 = vld [vmem:[%s1009_s1 + $0x50] sm:$0xff]  }
   0x5   :  { %660 = vmatprep.subr.bf16.mxu0 %v765_v4  ;;  %v772_v11 = vld [vmem:[%s1009_s1 + $0xa0] sm:$0xff]   ;;  %v775_v14 = vld [vmem:[%s1009_s1 + $0x98] sm:$0xff]   ;;  %v778_v17 = vld [vmem:[%s1009_s1 + $0x90] sm:$0xff]   ;;  %vm25_vm3 = vcmp.lt.s32.totalorder %v959_v54, 2  ;;  %vm593_vm11 = vcmp.eq.s32.totalorder %v959_v54, 0  ;;  %vm596_vm12 = vcmp.eq.s32.totalorder %v959_v54, 1 }
   0x6   :  { %v773_v12 = vld [vmem:[%s1009_s1 + $0x20] sm:$0xff]   ;;  %v776_v15 = vld [vmem:[%s1009_s1 + $0x18] sm:$0xff]   ;;  %v779_v18 = vld [vmem:[%s1009_s1 + $0x10] sm:$0xff]   ;;  %v963_v59 = vsel %vm25_vm3, 1.0, %v800_v0  ;;  %vm600_vm13 = vcmp.eq.s32.totalorder %v959_v54, 2  ;;  %vm604_vm14 = vcmp.eq.s32.totalorder %v959_v54, 3 }
   0x7   :  { %705 = vmatpush3.bf16.msra.mxu1 %v766_v5  ;;  %v780_v19 = vld [vmem:[%s1009_s1 + $0x48] sm:$0xff]   ;;  %v28_v22 = vld [vmem:[%s1010_s0] sm:$0xff]  ;;  %v789_v29 = vld [vmem:[%s1011_s2 + $0x30] ss:$0 sps:$4 sm:$0x33]  }
   0x8   :  { %661 = vmatpush3.bf16.msra.mxu0 %v767_v6  ;;  %706 = vmatprep.subr.bf16.mxu1 %v800_v0  ;;  %v781_v20 = vld [vmem:[%s1009_s1 + $0x88] sm:$0xff]   ;;  %v783_v23 = vld [vmem:[%s1009_s1 + $0x40] sm:$0xff]   ;;  %v619_v24 = vcombine.high %v28_v22, %v28_v22  ;;  %v618_v28 = vcombine.low %v28_v22, %v28_v22  ;;  %v395_v30 = vsel %vm393_vm1, %v789_v29, 0  ;;  %v792_v33 = vld [vmem:[%s1011_s2 + $0x18] sm:$0xff]  }
   0x9   :  { %662 = vmatprep.subr.bf16.mxu0 %v768_v7  ;;  %v782_v21 = vld [vmem:[%s1009_s1 + $0x8] sm:$0xff]   ;;  %v784_v25 = vld [vmem:[%s1009_s1 + $0x80] sm:$0xff]   ;;  %v793_v34 = vld [vmem:[%s1011_s2 + $0x10] sm:$0xff]  }
   0xa   :  { %265 = vmatprep.mubr.bf16.mxu0 %v619_v24  ;;  %v785_v26 = vld [vmem:[%s1009_s1] sm:$0xff]   ;;  %v788_v27 = vld [vmem:[%s1010_s0 + $0x8] ss:$0 sps:$4 sm:$0xff]   ;;  %v796_v1 = vld [vmem:[%s1012_s3 + $0x18] ss:$0 sps:$4 sm:$0x11]  }
   0xb   :  { %707 = vmatpush3.bf16.msra.mxu1 %v769_v8  ;;  %v790_v31 = vld [vmem:[%s1011_s2 + $0x28] sm:$0xff]   ;;  %v791_v32 = vld [vmem:[%s1011_s2 + $0x20] sm:$0xff]   ;;  %v495_v2 = vsel %vm493_vm5, %v796_v1, 0  ;;  %v797_v3 = vld [vmem:[%s1012_s3 + $0x10] sm:$0xff]  }
   0xc   :  { %663 = vmatpush3.bf16.msra.mxu0 %v770_v9  ;;  %708 = vmatprep.subr.bf16.mxu1 %v800_v0  ;;  %v794_v35 = vld [vmem:[%s1011_s2 + $0x8] sm:$0xff]   ;;  %v795_v36 = vld [vmem:[%s1011_s2] sm:$0xff]  }
   0xd   :  { %664 = vmatprep.subr.bf16.mxu0 %v771_v10  ;;  %v798_v4 = vld [vmem:[%s1012_s3 + $0x8] sm:$0xff]   ;;  %v799_v5 = vld [vmem:[%s1012_s3] sm:$0xff]  }
   0xf   :  { %709 = vmatpush3.bf16.msra.mxu1 %v772_v11 }
  0x10   :  { %665 = vmatpush3.bf16.msra.mxu0 %v773_v12  ;;  %710 = vmatprep.subr.bf16.mxu1 %v800_v0 }
  0x11   :  { %666 = vmatprep.subr.bf16.mxu0 %v774_v13 }
  0x13   :  { %711 = vmatpush3.bf16.msra.mxu1 %v775_v14 }
  0x14   :  { %667 = vmatpush3.bf16.msra.mxu0 %v776_v15  ;;  %712 = vmatprep.subr.bf16.mxu1 %v800_v0 }
  0x15   :  { %668 = vmatprep.subr.bf16.mxu0 %v777_v16 }
  0x17   :  { %713 = vmatpush3.bf16.msra.mxu1 %v778_v17 }
  0x18   :  { %669 = vmatpush3.bf16.msra.mxu0 %v779_v18  ;;  %714 = vmatprep.subr.bf16.mxu1 %v800_v0 }
  0x19   :  { %670 = vmatprep.subr.bf16.mxu0 %v780_v19 }
  0x1b   :  { %715 = vmatpush3.bf16.msra.mxu1 %v781_v20 }
  0x1c   :  { %671 = vmatpush3.bf16.msra.mxu0 %v782_v21  ;;  %716 = vmatprep.subr.bf16.mxu1 %v800_v0 }
  0x1d   :  { %672 = vmatprep.subr.bf16.mxu0 %v783_v23 }
  0x1f   :  { %717 = vmatpush3.bf16.msra.mxu1 %v784_v25 }
  0x20   :  { %673 = vmatpush3.bf16.msra.mxu0 %v785_v26  ;;  %740 = vmatprep.subr.bf16.mxu1 %v800_v0 }
  0x21   :  { %722 = vmatprep.subr.bf16.mxu0 %v800_v0 }
  0x22   :  { %719 = vmatmul.mubr.bf16.vlgmr.msra.gmra.mxu1 %v788_v27 }
  0x23   :  { %266 = vmatmul.mubr.bf16.vlgmr.msra.gmra.mxu0 %v618_v28  ;;  %748 = vmatprep.mubr.msk.bf16.mxu1 %vm801_vm0, %v800_v0 }
  0x24   :  { %736 = vmatprep.mubr.msk.bf16.mxu0 %vm801_vm0, %v800_v0  ;;  %723 = vmatpush3.bf16.msra.mxu0 %v395_v30 }
  0x25   :  { %724 = vmatprep.subr.bf16.mxu0 %v800_v0  ;;  %741 = vmatpush3.bf16.msra.mxu1 %v495_v2 }
  0x26   :  { %742 = vmatprep.subr.bf16.mxu1 %v800_v0 }
  0x28   :  { %725 = vmatpush3.bf16.msra.mxu0 %v790_v31 }
  0x29   :  { %726 = vmatprep.subr.bf16.mxu0 %v800_v0  ;;  %743 = vmatpush3.bf16.msra.mxu1 %v797_v3 }
  0x2a   :  { %744 = vmatprep.subr.bf16.mxu1 %v800_v0 }
  0x2c   :  { %727 = vmatpush3.bf16.msra.mxu0 %v791_v32 }
  0x2d   :  { %728 = vmatprep.subr.bf16.mxu0 %v800_v0  ;;  %745 = vmatpush3.bf16.msra.mxu1 %v798_v4 }
  0x2e   :  { %746 = vmatprep.subr.bf16.mxu1 %v800_v0 }
  0x30   :  { %729 = vmatpush3.bf16.msra.mxu0 %v792_v33 }
  0x31   :  { %730 = vmatprep.subr.bf16.mxu0 %v800_v0  ;;  %747 = vmatpush3.bf16.msra.mxu1 %v799_v5 }
  0x34   :  { %731 = vmatpush3.bf16.msra.mxu0 %v793_v34  ;;  %v561_v34 = vld [vmem:[%s1013_s4] sm:$0x1] }
  0x35   :  { %732 = vmatprep.subr.bf16.mxu0 %v800_v0 }
  0x38   :  { %733 = vmatpush3.bf16.msra.mxu0 %v794_v35 }
  0x39   :  { %734 = vmatprep.subr.bf16.mxu0 %v800_v0 }
  0x3c   :  { %735 = vmatpush3.bf16.msra.mxu0 %v795_v36 }
  0xe2   :  { %v307_v37 = vpop.f32.mrf.mxu1 }
  0xe3   :  { %v674_v38 = vpop.f32.mrf.mxu0 }
  0xe4   :  { %v720_v39 = vpop.f32.mrf.mxu1 }
  0xe5   :  { %v675_v40 = vpop.f32.mrf.mxu0 }
  0xe6   :  { %v676_v41 = vadd.f32 %v675_v40, %v674_v38  ;;  %v310_v42 = vpop.f32.mrf.mxu1  ;;  %v565_v38 = vsub.s32 0, %v959_v54 }
  0xe7   :  { %v677_v43 = vpop.f32.mrf.mxu0 }
  0xe8   :  { %v308_v44 = vadd.f32 %v676_v41, %v307_v37  ;;  %v721_v45 = vpop.f32.mrf.mxu1  ;;  %v562_v37 = vunpack.c.l.bf16 %v561_v34 }
  0xe9   :  { %v678_v46 = vpop.f32.mrf.mxu0 }
  0xea   :  { %v314_v47 = vsel %vm313_vm2, %v308_v44, 0.0  ;;  %v566_v40 = vrot.slane %v562_v37, %v565_v38 }
  0xeb   :  { %v315_v48 = vrot.slane %v314_v47, 4 }
  0xed   :  { %v316_v49 = vadd.f32 %v315_v48, %v314_v47 }
  0xef   :  { %v317_v50 = vrot.slane %v316_v49, 2 }
  0xf1   :  { %v318_v52 = vadd.f32 %v317_v50, %v316_v49 }
  0xf3   :  { %v319_v53 = vrot.slane %v318_v52, 1 }
  0xf5   :  { %v320_v55 = vadd.f32 %v319_v53, %v318_v52 }
  0xf7   :  { %v321_v56 = vmul.f32 0.5, %v320_v55 }
  0xf9   :  { %v322_v57 = vsub.f32 %v308_v44, %v321_v56 }
  0xfb   :  { %v323_v58 = vmax.f32 %v322_v57, 0.0 }
  0xfd   :  { %vm324_vm4 = vcmp.ge.f32.partialorder %v323_v58, 0.1 }
  0xfe   :  { %v325_v60 = vsel %vm324_vm4, %v323_v58, 0.0 }
  0xff   :  { %v326_v61 = vmul.f32 %v963_v59, %v325_v60 }
 0x101   :  { %v337_v62 = vpack.c.bf16 %v326_v61, %v326_v61  ;;  %v967_v63 = vsel %vm313_vm2, %v326_v61, 0.0 }
 0x103   :  { %737 = vmatmul.mubr.msk.bf16.vlgmr.msra.gmra.mxu0 %vm313_vm2, %v337_v62 }
 0x1c3   :  { %v431_v6 = vpop.f32.mrf.mxu0 }
 0x1c4   :  { %v438_v7 = vsel %vm437_vm6, %v431_v6, 0.0 }
 0x1c5   :  { %v439_v8 = vrot.slane %v438_v7, 4  ;;  %v738_v9 = vpop.f32.mrf.mxu0 }
 0x1c7   :  { %v440_v10 = vadd.f32 %v439_v8, %v438_v7  ;;  %v434_v11 = vpop.f32.mrf.mxu0 }
 0x1c9   :  { %v441_v12 = vrot.slane %v440_v10, 2  ;;  %v739_v13 = vpop.f32.mrf.mxu0 }
 0x1cb   :  { %v442_v14 = vadd.f32 %v441_v12, %v440_v10 }
 0x1cd   :  { %v443_v15 = vrot.slane %v442_v14, 1 }
 0x1cf   :  { %v444_v16 = vadd.f32 %v443_v15, %v442_v14 }
 0x1d1   :  { %v445_v17 = vmul.f32 0.5, %v444_v16 }
 0x1d3   :  { %v446_v18 = vsub.f32 %v431_v6, %v445_v17 }
 0x1d5   :  { %v447_v19 = vmax.f32 %v446_v18, 0.0 }
 0x1d7   :  { %vm448_vm7 = vcmp.ge.f32.partialorder %v447_v19, 0.1 }
 0x1d8   :  { %v449_v20 = vsel %vm448_vm7, %v447_v19, 0.0 }
 0x1d9   :  { %v450_v0 = vmul.f32 %v963_v59, %v449_v20 }
 0x1db   :  { %v451_v21 = vsel %vm437_vm6, %v450_v0, 0.0  ;;  %v461_v22 = vpack.c.bf16 %v450_v0, %v450_v0 }
 0x1dc   :  { %452 = vadd.xlane.f32.xlu1 %v451_v21 }
 0x1dd   :  { %749 = vmatmul.mubr.msk.bf16.vlgmr.msra.gmra.mxu1 %vm437_vm6, %v461_v22 }
 0x265   :  { %v453_v46 = vpop.xlane.xlu1 %452 }
 0x266   :  { %v454_v47 = vrot.slane %v453_v46, 4 }
 0x268   :  { %v455_v50 = vadd.f32 %v454_v47, %v453_v46 }
 0x26a   :  { %v456_v56 = vrot.slane %v455_v50, 2 }
 0x26c   :  { %v457_v2 = vadd.f32 %v456_v56, %v455_v50 }
 0x26e   :  { %v458_v7 = vrot.slane %v457_v2, 1 }
 0x270   :  { %v459_v13 = vadd.f32 %v458_v7, %v457_v2 }
 0x29d   :  { %v531_v23 = vpop.f32.mrf.mxu1 }
 0x29e   :  { %v538_v24 = vsel %vm537_vm8, %v531_v23, 0.0 }
 0x29f   :  { %v539_v25 = vrot.slane %v538_v24, 4  ;;  %v750_v26 = vpop.f32.mrf.mxu1 }
 0x2a1   :  { %v540_v27 = vadd.f32 %v539_v25, %v538_v24  ;;  %v534_v28 = vpop.f32.mrf.mxu1 }
 0x2a3   :  { %v541_v29 = vrot.slane %v540_v27, 2  ;;  %v751_v30 = vpop.f32.mrf.mxu1 }
 0x2a5   :  { %v542_v31 = vadd.f32 %v541_v29, %v540_v27 }
 0x2a7   :  { %v543_v32 = vrot.slane %v542_v31, 1 }
 0x2a9   :  { %v544_v33 = vadd.f32 %v543_v32, %v542_v31 }
 0x2ab   :  { %v545_v35 = vmul.f32 0.5, %v544_v33 }
 0x2ad   :  { %v546_v36 = vsub.f32 %v531_v23, %v545_v35 }
 0x2af   :  { %v547_v39 = vmax.f32 %v546_v36, 0.0 }
 0x2b1   :  { %vm548_vm9 = vcmp.ge.f32.partialorder %v547_v39, 0.1 }
 0x2b2   :  { %v549_v41 = vsel %vm548_vm9, %v547_v39, 0.0 }
 0x2b3   :  { %v550_v42 = vmul.f32 %v963_v59, %v549_v41 }
 0x2b5   :  { %v551_v43 = vsel %vm537_vm8, %v550_v42, 0.0  ;;  %v567_v44 = vmul.f32 %v566_v40, %v550_v42 }
 0x2b6   :  { %552 = vadd.xlane.f32.xlu1 %v551_v43 }
 0x2b7   :  { %v568_v45 = vsel %vm537_vm8, %v567_v44, 0.0 }
 0x2b8   :  { %569 = vadd.xlane.f32.xlu0 %v568_v45 }
 0x2bc   :  { %328 = vadd.xlane.f32.xlu0 %v967_v63 }
 0x33f   :  { %v553_v48 = vpop.xlane.xlu1 %552 }
 0x340   :  { %v554_v49 = vrot.slane %v553_v48, 4 }
 0x341   :  { %v570_v51 = vpop.xlane.xlu0 %569 }
 0x342   :  { %v555_v52 = vadd.f32 %v554_v49, %v553_v48  ;;  %v571_v53 = vrot.slane %v570_v51, 4 }
 0x344   :  { %v572_v55 = vadd.f32 %v571_v53, %v570_v51  ;;  %v556_v58 = vrot.slane %v555_v52, 2 }
 0x345   :  { %v329_v57 = vpop.xlane.xlu0 %328 }
 0x346   :  { %v573_v60 = vrot.slane %v572_v55, 2  ;;  %v330_v61 = vrot.slane %v329_v57, 4  ;;  %v557_v3 = vadd.f32 %v556_v58, %v555_v52 }
 0x348   :  { %v574_v62 = vadd.f32 %v573_v60, %v572_v55  ;;  %v331_v1 = vadd.f32 %v330_v61, %v329_v57  ;;  %v558_v10 = vrot.slane %v557_v3, 1 }
 0x34a   :  { %v575_v4 = vrot.slane %v574_v62, 1  ;;  %v332_v63 = vrot.slane %v331_v1, 2  ;;  %v559_v14 = vadd.f32 %v558_v10, %v557_v3 }
 0x34c   :  { %v576_v5 = vadd.f32 %v575_v4, %v574_v62  ;;  %v333_v6 = vadd.f32 %v332_v63, %v331_v1 }
 0x34e   :  { %v577_v8 = vmul.f32 0.5, %v576_v5  ;;  %v334_v9 = vrot.slane %v333_v6, 1 }
 0x350   :  { %v578_v11 = vsub.f32 %v570_v51, %v577_v8  ;;  %v335_v12 = vadd.f32 %v334_v9, %v333_v6 }
 0x352   :  { %752 = vpush %v335_v12  ;;  %v579_v15 = vmul.f32 %v963_v59, %v578_v11 }
 0x353   :  { %754 = vpush %v459_v13 }
 0x354   :  { %756 = vpush %v559_v14  ;;  %v580_v16 = vand.u32 2147483647, %v579_v15 }
 0x355   :  { %592 = vst.msk [vmem:[%s1014_s5] sm:$0xff] %vm581_vm10, %v579_v15 }
 0x356   :  { %v582_v17 = vsel %vm581_vm10, %v580_v16, 0.0 }
 0x357   :  { %583 = vadd.xlane.f32.xlu0 %v582_v17 }
 0x383   :  { %s753_s22 = spop %752 }
 0x384   :  { %s755_s23 = spop %754  ;;  %v594_v59 = vstv %s753_s22 }
 0x385   :  { %v597_v24 = vstv %s755_s23  ;;  %v595_v25 = vsel %vm593_vm11, %v594_v59, 0.0  ;;  %s757_s5 = spop %756 }
 0x386   :  { %v598_v26 = vsel %vm596_vm12, %v597_v24, 0.0  ;;  %v601_v28 = vstv %s757_s5 }
 0x387   :  { %v599_v27 = vadd.f32 %v598_v26, %v595_v25  ;;  %v602_v29 = vsel %vm600_vm13, %v601_v28, 0.0 }
 0x389   :  { %v603_v30 = vadd.f32 %v602_v29, %v599_v27 }
 0x3e0   :  { %v584_v18 = vpop.xlane.xlu0 %583 }
 0x3e1   :  { %v585_v19 = vrot.slane %v584_v18, 4 }
 0x3e3   :  { %v586_v20 = vadd.f32 %v585_v19, %v584_v18 }
 0x3e5   :  { %v587_v0 = vrot.slane %v586_v20, 2 }
 0x3e7   :  { %v588_v21 = vadd.f32 %v587_v0, %v586_v20 }
 0x3e9   :  { %v589_v22 = vrot.slane %v588_v21, 1 }
 0x3eb   :  { %v590_v23 = vadd.f32 %v589_v22, %v588_v21 }
 0x3ed   :  { %758 = vpush %v590_v23 }
 0x41e   :  { %s759_s24 = spop %758 }
 0x41f   :  { %v605_v31 = vstv %s759_s24 }
 0x420   :  { %v606_v32 = vsel %vm604_vm14, %v605_v31, 0.0 }
 0x421   :  { %v607_v33 = vadd.f32 %v606_v32, %v603_v30 }
 0x423   :  { %608 = vst [vmem:[%s1015_s6] sm:$0xff] %v607_v33 }

</bundles_post_ra>
